<compile_context>
chip_gen: v7x
topology: tpu7x:2x2x1
jax: 0.10.0
libtpu: 0.0.40
codegen_flags: <defaults>
</compile_context>

<pallas_src>
import math

import jax
import jax.numpy as jnp
from jax.experimental import pallas as pl
from jax.experimental.pallas import tpu as pltpu

# ----------------------- small synthetic BERT config ------------------------
HIDDEN = 32
NUM_HEADS = 2
HEAD_DIM = HIDDEN // NUM_HEADS
INTERMEDIATE = 64
NUM_LAYERS = 2
VOCAB = 32
MAX_POS = 64
LN_EPS = 1e-12
PAD_ID, CLS_ID, SEP_ID = 0, 2, 3          # tokenizer.pad/cls/sep_token_id
NUM_RESIDUE_SYMBOLS = 26                  # len(data.Protein.id2residue_symbol)
NEG_INF = -1e9

_LAYER_ARG_ORDER = ['wqkv', 'bqkv', 'wo', 'bo', 'ln1_g', 'ln1_b',
                    'wi', 'bi', 'wo2', 'bo2', 'ln2_g', 'ln2_b']


def _layernorm(x, g, b):
    mu = jnp.mean(x, axis=-1, keepdims=True)
    var = jnp.mean(jnp.square(x - mu), axis=-1, keepdims=True)
    return (x - mu) * jax.lax.rsqrt(var + LN_EPS) * g + b


# ------------------------------ fused encoder --------------------------------
def fused_bert_encoder(emb, max_len, params):
    """emb: (B, S, H) pre-LayerNorm embedding sums (f32), max_len: python int.

    Returns (residue_h (B,S,H), pooled (B,1,H)).
    """
    B, S, H = emb.shape
    st = params['stacked']
    L = st['wqkv'].shape[0]
    # Only the extra TPU-tiling padding columns (>= max_len) are masked. Like
    # the PyTorch reference call `self.model(input)` (no attention_mask), PAD
    # tokens inside max_len still attend.
    need_mask = max_len < S
    scale = 1.0 / math.sqrt(HEAD_DIM)

    def kernel(emb_ref, embg_ref, embb_ref,
               wqkv_ref, bqkv_ref, wo_ref, bo_ref, ln1g_ref, ln1b_ref,
               wi_ref, bi_ref, wo2_ref, bo2_ref, ln2g_ref, ln2b_ref,
               pw_ref, pb_ref,
               h_out_ref, pooled_ref):
        # Embedding LayerNorm seeds the hidden state; it stays resident for
        # all layers because the whole layer loop lives inside this grid step.
        h = _layernorm(emb_ref[0], embg_ref[...], embb_ref[...])

        if need_mask:
            col = jax.lax.broadcasted_iota(jnp.int32, (1, S), 1)
            mask = jnp.where(col < max_len, 0.0, NEG_INF).astype(jnp.float32)
        else:
            mask = None

        for l in range(L):                     # static unroll (L is tiny)
            # ---- attention: fused QKV projection, one MXU push per layer
            qkv = (jnp.dot(h, wqkv_ref[l], preferred_element_type=jnp.float32)
                   + bqkv_ref[l])                              # (S, 3H)
            ctxs = []
            for hd in range(NUM_HEADS):
                lo = hd * HEAD_DIM
                q = qkv[:, lo:lo + HEAD_DIM]
                k = qkv[:, H + lo:H + lo + HEAD_DIM]
                v = qkv[:, 2 * H + lo:2 * H + lo + HEAD_DIM]
                s = jax.lax.dot_general(q, k, (((1,), (1,)), ((), ())),
                                        preferred_element_type=jnp.float32)
                s = s * scale
                if mask is not None:
                    s = s + mask                               # (S, S)
                s = s - jnp.max(s, axis=-1, keepdims=True)
                p = jnp.exp(s)
                p = p * pl.reciprocal(jnp.sum(p, axis=-1, keepdims=True),
                                      approx=True)
                ctxs.append(jnp.dot(p, v, preferred_element_type=jnp.float32))
            ctx = jnp.concatenate(ctxs, axis=-1)               # (S, H)
            attn = (jnp.dot(ctx, wo_ref[l], preferred_element_type=jnp.float32)
                    + bo_ref[l])
            h1 = _layernorm(attn + h, ln1g_ref[l], ln1b_ref[l])

            # ---- feed-forward
            ff = (jnp.dot(h1, wi_ref[l], preferred_element_type=jnp.float32)
                  + bi_ref[l])
            # TODO(synk): HF BertModel's default "gelu" is the exact erf form;
            # tanh approximation used to guarantee Mosaic lowering.
            ff = jax.nn.gelu(ff, approximate=True)
            ff = (jnp.dot(ff, wo2_ref[l], preferred_element_type=jnp.float32)
                  + bo2_ref[l])
            h = _layernorm(ff + h1, ln2g_ref[l], ln2b_ref[l])

        h_out_ref[0] = h
        # ---- pooler on the CLS row only: tanh(W @ h[0] + b)
        pooled_ref[0] = jnp.tanh(
            jnp.dot(h[0:1, :], pw_ref[...], preferred_element_type=jnp.float32)
            + pb_ref[...])

    def const_spec(shape):
        # Full-array block, same (0,..) block index for every grid step ->
        # fetched once, stays resident in VMEM across the whole batch.
        nd = len(shape)
        return pl.BlockSpec(tuple(shape), lambda b, _nd=nd: (0,) * _nd)

    in_specs = [pl.BlockSpec((1, S, H), lambda b: (b, 0, 0)),
                const_spec(params['emb_ln_g'].shape),
                const_spec(params['emb_ln_b'].shape)]
    args = [emb, params['emb_ln_g'], params['emb_ln_b']]
    for name in _LAYER_ARG_ORDER:
        w = st[name]
        in_specs.append(const_spec(w.shape))
        args.append(w)
    in_specs += [const_spec(params['pooler_w'].shape),
                 const_spec(params['pooler_b'].shape)]
    args += [params['pooler_w'], params['pooler_b']]

    out_shapes = (jax.ShapeDtypeStruct((B, S, H), jnp.float32),
                  jax.ShapeDtypeStruct((B, 1, H), jnp.float32))
    # TODO(synk): for real model sizes keep HIDDEN a multiple of 128 (or
    # flatten the writeback block) so the hidden-state store is lane-dense.
    out_specs = [pl.BlockSpec((1, S, H), lambda b: (b, 0, 0)),
                 pl.BlockSpec((1, 1, H), lambda b: (b, 0, 0))]

    residue_h, pooled = pl.pallas_call(
        kernel,
        out_shape=out_shapes,
        grid_spec=pltpu.PrefetchScalarGridSpec(
            num_scalar_prefetch=0,
            grid=(B,),
            in_specs=in_specs,
            out_specs=out_specs),
        compiler_params=pltpu.CompilerParams(
            dimension_semantics=("parallel",),
            vmem_limit_bytes=32 * 1024 * 1024),
    )(*args)
    return residue_h, pooled


# ----------------------------- parameter init ---------------------------------
def init_params(key):
    keys = jax.random.split(key, 4 + NUM_LAYERS)

    def normal(k, shape):
        return (jax.random.normal(k, shape, jnp.float32) * 0.02).astype(jnp.float32)

    params = {
        'word_emb': normal(keys[0], (VOCAB, HIDDEN)),
        'pos_emb': normal(keys[1], (MAX_POS, HIDDEN)),
        'type_emb': normal(keys[2], (2, HIDDEN)),
        'emb_ln_g': jnp.ones((1, HIDDEN), jnp.float32),
        'emb_ln_b': jnp.zeros((1, HIDDEN), jnp.float32),
        'pooler_w': normal(keys[3], (HIDDEN, HIDDEN)),
        'pooler_b': jnp.zeros((1, HIDDEN), jnp.float32),
        # construct_mapping: residue symbol i -> BERT vocab id (protein-BERT style)
        'mapping': (jnp.arange(NUM_RESIDUE_SYMBOLS, dtype=jnp.int32) + 5),
    }

    # Stacked per-layer weights (leading L axis); fused QKV layout (H, 3H).
    acc = {name: [] for name in _LAYER_ARG_ORDER}
    for l in range(NUM_LAYERS):
        lk = jax.random.split(keys[4 + l], 4)
        acc['wqkv'].append(normal(lk[0], (HIDDEN, 3 * HIDDEN)))
        acc['bqkv'].append(jnp.zeros((1, 3 * HIDDEN), jnp.float32))
        acc['wo'].append(normal(lk[1], (HIDDEN, HIDDEN)))
        acc['bo'].append(jnp.zeros((1, HIDDEN), jnp.float32))
        acc['ln1_g'].append(jnp.ones((1, HIDDEN), jnp.float32))
        acc['ln1_b'].append(jnp.zeros((1, HIDDEN), jnp.float32))
        acc['wi'].append(normal(lk[2], (HIDDEN, INTERMEDIATE)))
        acc['bi'].append(jnp.zeros((1, INTERMEDIATE), jnp.float32))
        acc['wo2'].append(normal(lk[3], (INTERMEDIATE, HIDDEN)))
        acc['bo2'].append(jnp.zeros((1, HIDDEN), jnp.float32))
        acc['ln2_g'].append(jnp.ones((1, HIDDEN), jnp.float32))
        acc['ln2_b'].append(jnp.zeros((1, HIDDEN), jnp.float32))
    params['stacked'] = {k: jnp.stack(v, axis=0) for k, v in acc.items()}
    return params


# ----------------------------- OntoProtein forward -----------------------------
def onto_protein_forward(params, residue_type, num_residues):
    """residue_type: concatenated residue ids of all graphs; num_residues: list[int]."""
    tokens = params['mapping'][residue_type]                     # mapping[input]
    size_ext = [n + 2 for n in num_residues]                     # + CLS + SEP
    max_len = max(size_ext)                                      # original padded length
    S = max(8, ((max_len + 7) // 8) * 8)                         # extra TPU tiling pad
    assert S <= MAX_POS, "sequence longer than position embedding table"

    # _extend(CLS, ..., SEP) + variadic_to_padded(value=PAD)   (host-side glue)
    rows, offset = [], 0
    for n in num_residues:
        rows.append(jnp.concatenate([
            jnp.array([CLS_ID], jnp.int32),
            tokens[offset:offset + n].astype(jnp.int32),
            jnp.array([SEP_ID], jnp.int32),
            jnp.full((S - (n + 2),), PAD_ID, jnp.int32)]))
        offset += n
    input_ids = jnp.stack(rows)                                  # (B, S)

    # BERT embeddings (gathers are glue; LayerNorm + encoder + pooler fused kernel)
    emb = (params['word_emb'][input_ids]
           + params['pos_emb'][:S][None]
           + params['type_emb'][0][None, None]).astype(jnp.float32)

    residue_h, pooled = fused_bert_encoder(emb, max_len, params)

    # readout='pooler' -> graph_feature = pooler_output
    graph_feature = pooled[:, 0, :]                              # (B, H)

    # padded_to_variadic + multi_slice_mask: keep positions [1, 1+n) of each graph
    pieces = [residue_h[i, 1:1 + n, :] for i, n in enumerate(num_residues)]
    residue_feature = jnp.concatenate(pieces, axis=0)

    return {'graph_feature': graph_feature, 'residue_feature': residue_feature}


if __name__ == "__main__":
    key = jax.random.PRNGKey(0)
    pkey, dkey = jax.random.split(key)
    params = init_params(pkey)

    num_residues = [6, 10]                                       # graph.num_residues
    total = sum(num_residues)
    residue_type = jax.random.randint(dkey, (total,), 0, 20, dtype=jnp.int32)

    out = onto_protein_forward(params, residue_type, num_residues)
    out = jax.block_until_ready(out)

    assert out['graph_feature'].shape == (len(num_residues), HIDDEN)
    assert out['residue_feature'].shape == (total, HIDDEN)
    assert bool(jnp.all(jnp.isfinite(out['graph_feature'])))
    assert bool(jnp.all(jnp.isfinite(out['residue_feature'])))
    print("KERNEL_OK")
</pallas_src>

<mosaic_0001>
module attributes {stable_mosaic.version = 11 : i64} {
  func.func @kernel(%arg0: i32, %arg1: memref<1x16x32xf32, #tpu.memory_space<vmem>>, %arg2: memref<1x32xf32, #tpu.memory_space<vmem>>, %arg3: memref<1x32xf32, #tpu.memory_space<vmem>>, %arg4: memref<2x32x96xf32, #tpu.memory_space<vmem>>, %arg5: memref<2x1x96xf32, #tpu.memory_space<vmem>>, %arg6: memref<2x32x32xf32, #tpu.memory_space<vmem>>, %arg7: memref<2x1x32xf32, #tpu.memory_space<vmem>>, %arg8: memref<2x1x32xf32, #tpu.memory_space<vmem>>, %arg9: memref<2x1x32xf32, #tpu.memory_space<vmem>>, %arg10: memref<2x32x64xf32, #tpu.memory_space<vmem>>, %arg11: memref<2x1x64xf32, #tpu.memory_space<vmem>>, %arg12: memref<2x64x32xf32, #tpu.memory_space<vmem>>, %arg13: memref<2x1x32xf32, #tpu.memory_space<vmem>>, %arg14: memref<2x1x32xf32, #tpu.memory_space<vmem>>, %arg15: memref<2x1x32xf32, #tpu.memory_space<vmem>>, %arg16: memref<32x32xf32, #tpu.memory_space<vmem>>, %arg17: memref<1x32xf32, #tpu.memory_space<vmem>>, %arg18: memref<1x16x32xf32, #tpu.memory_space<vmem>>, %arg19: memref<1x1x32xf32, #tpu.memory_space<vmem>>) attributes {dimension_semantics = [#tpu.dimension_semantics<parallel>], iteration_bounds = array<i64: 2>, scalar_prefetch = 0 : i64, scratch_operands = 0 : i64, tpu.core_type = #tpu.core_type<tc>, window_params = [{transform_indices = @transform_0, window_bounds = array<i64: 1, 16, 32>}, {pipeline_mode = #tpu.pipeline_mode<synchronous>, transform_indices = @transform_1, window_bounds = array<i64: 1, 32>}, {pipeline_mode = #tpu.pipeline_mode<synchronous>, transform_indices = @transform_2, window_bounds = array<i64: 1, 32>}, {pipeline_mode = #tpu.pipeline_mode<synchronous>, transform_indices = @transform_3, window_bounds = array<i64: 2, 32, 96>}, {pipeline_mode = #tpu.pipeline_mode<synchronous>, transform_indices = @transform_4, window_bounds = array<i64: 2, 1, 96>}, {pipeline_mode = #tpu.pipeline_mode<synchronous>, transform_indices = @transform_5, window_bounds = array<i64: 2, 32, 32>}, {pipeline_mode = #tpu.pipeline_mode<synchronous>, transform_indices = @transform_6, window_bounds = array<i64: 2, 1, 32>}, {pipeline_mode = #tpu.pipeline_mode<synchronous>, transform_indices = @transform_7, window_bounds = array<i64: 2, 1, 32>}, {pipeline_mode = #tpu.pipeline_mode<synchronous>, transform_indices = @transform_8, window_bounds = array<i64: 2, 1, 32>}, {pipeline_mode = #tpu.pipeline_mode<synchronous>, transform_indices = @transform_9, window_bounds = array<i64: 2, 32, 64>}, {pipeline_mode = #tpu.pipeline_mode<synchronous>, transform_indices = @transform_10, window_bounds = array<i64: 2, 1, 64>}, {pipeline_mode = #tpu.pipeline_mode<synchronous>, transform_indices = @transform_11, window_bounds = array<i64: 2, 64, 32>}, {pipeline_mode = #tpu.pipeline_mode<synchronous>, transform_indices = @transform_12, window_bounds = array<i64: 2, 1, 32>}, {pipeline_mode = #tpu.pipeline_mode<synchronous>, transform_indices = @transform_13, window_bounds = array<i64: 2, 1, 32>}, {pipeline_mode = #tpu.pipeline_mode<synchronous>, transform_indices = @transform_14, window_bounds = array<i64: 2, 1, 32>}, {pipeline_mode = #tpu.pipeline_mode<synchronous>, transform_indices = @transform_15, window_bounds = array<i64: 32, 32>}, {pipeline_mode = #tpu.pipeline_mode<synchronous>, transform_indices = @transform_16, window_bounds = array<i64: 1, 32>}, {transform_indices = @transform_17, window_bounds = array<i64: 1, 16, 32>}, {transform_indices = @transform_18, window_bounds = array<i64: 1, 1, 32>}]} {
    %c0 = arith.constant 0 : index
    %c0_0 = arith.constant 0 : index
    %c0_1 = arith.constant 0 : index
    %0 = vector.load %arg1[%c0, %c0_0, %c0_1] : memref<1x16x32xf32, #tpu.memory_space<vmem>>, vector<1x16x32xf32>
    %1 = vector.shape_cast %0 : vector<1x16x32xf32> to vector<16x32xf32>
    %c0_2 = arith.constant 0 : index
    %c0_3 = arith.constant 0 : index
    %2 = vector.load %arg2[%c0_2, %c0_3] : memref<1x32xf32, #tpu.memory_space<vmem>>, vector<1x32xf32>
    %c0_4 = arith.constant 0 : index
    %c0_5 = arith.constant 0 : index
    %3 = vector.load %arg3[%c0_4, %c0_5] : memref<1x32xf32, #tpu.memory_space<vmem>>, vector<1x32xf32>
    %cst = arith.constant dense<0.000000e+00> : vector<16xf32>
    %4 = vector.multi_reduction <add>, %1, %cst [1] : vector<16x32xf32> to vector<16xf32>
    %5 = vector.shape_cast %4 : vector<16xf32> to vector<16x1xf32>
    %cst_6 = arith.constant 3.200000e+01 : f32
    %6 = vector.broadcast %cst_6 : f32 to vector<16x1xf32>
    %7 = arith.divf %5, %6 : vector<16x1xf32>
    %8 = vector.broadcast %7 : vector<16x1xf32> to vector<16x32xf32>
    %9 = arith.subf %1, %8 : vector<16x32xf32>
    %10 = arith.mulf %9, %9 : vector<16x32xf32>
    %cst_7 = arith.constant dense<0.000000e+00> : vector<16xf32>
    %11 = vector.multi_reduction <add>, %10, %cst_7 [1] : vector<16x32xf32> to vector<16xf32>
    %12 = vector.shape_cast %11 : vector<16xf32> to vector<16x1xf32>
    %cst_8 = arith.constant 3.200000e+01 : f32
    %13 = vector.broadcast %cst_8 : f32 to vector<16x1xf32>
    %14 = arith.divf %12, %13 : vector<16x1xf32>
    %15 = vector.broadcast %7 : vector<16x1xf32> to vector<16x32xf32>
    %16 = arith.subf %1, %15 : vector<16x32xf32>
    %cst_9 = arith.constant 9.99999996E-13 : f32
    %17 = vector.broadcast %cst_9 : f32 to vector<16x1xf32>
    %18 = arith.addf %14, %17 : vector<16x1xf32>
    %19 = math.rsqrt %18 : vector<16x1xf32>
    %20 = vector.broadcast %19 : vector<16x1xf32> to vector<16x32xf32>
    %21 = arith.mulf %16, %20 : vector<16x32xf32>
    %22 = vector.broadcast %2 : vector<1x32xf32> to vector<16x32xf32>
    %23 = arith.mulf %21, %22 : vector<16x32xf32>
    %24 = vector.broadcast %3 : vector<1x32xf32> to vector<16x32xf32>
    %25 = arith.addf %23, %24 : vector<16x32xf32>
    %26 = tpu.iota {dimensions = array<i32: 1>} : vector<1x16xi32>
    %c12_i32 = arith.constant 12 : i32
    %27 = vector.broadcast %c12_i32 : i32 to vector<1x16xi32>
    %28 = arith.cmpi slt, %26, %27 : vector<1x16xi32>
    %cst_10 = arith.constant 0.000000e+00 : f32
    %cst_11 = arith.constant -1.000000e+09 : f32
    %29 = vector.broadcast %cst_10 : f32 to vector<1x16xf32>
    %30 = vector.broadcast %cst_11 : f32 to vector<1x16xf32>
    %31 = arith.select %28, %29, %30 : vector<1x16xi1>, vector<1x16xf32>
    %c0_12 = arith.constant 0 : index
    %c0_13 = arith.constant 0 : index
    %c0_14 = arith.constant 0 : index
    %32 = vector.load %arg4[%c0_12, %c0_13, %c0_14] : memref<2x32x96xf32, #tpu.memory_space<vmem>>, vector<1x32x96xf32>
    %33 = vector.shape_cast %32 : vector<1x32x96xf32> to vector<32x96xf32>
    %cst_15 = arith.constant dense<0.000000e+00> : vector<16x96xf32>
    %34 = tpu.matmul %25, %33, %cst_15 {dimension_numbers = #tpu.dot_dimension_numbers<[1], [0], [0], [1], [0, 0, 1, 1], [], []>} : vector<16x32xf32>, vector<32x96xf32>, vector<16x96xf32> -> vector<16x96xf32>
    %c0_16 = arith.constant 0 : index
    %c0_17 = arith.constant 0 : index
    %c0_18 = arith.constant 0 : index
    %35 = vector.load %arg5[%c0_16, %c0_17, %c0_18] : memref<2x1x96xf32, #tpu.memory_space<vmem>>, vector<1x1x96xf32>
    %36 = vector.shape_cast %35 : vector<1x1x96xf32> to vector<1x96xf32>
    %37 = vector.broadcast %36 : vector<1x96xf32> to vector<16x96xf32>
    %38 = arith.addf %34, %37 : vector<16x96xf32>
    %39 = vector.extract_strided_slice %38 {offsets = [0, 0], sizes = [16, 16], strides = [1, 1]} : vector<16x96xf32> to vector<16x16xf32>
    %40 = vector.extract_strided_slice %38 {offsets = [0, 32], sizes = [16, 16], strides = [1, 1]} : vector<16x96xf32> to vector<16x16xf32>
    %41 = vector.extract_strided_slice %38 {offsets = [0, 64], sizes = [16, 16], strides = [1, 1]} : vector<16x96xf32> to vector<16x16xf32>
    %cst_19 = arith.constant dense<0.000000e+00> : vector<16x16xf32>
    %42 = tpu.matmul %39, %40, %cst_19 {dimension_numbers = #tpu.dot_dimension_numbers<[1], [1], [0], [0], [0, 0, 1, 0], [], []>} : vector<16x16xf32>, vector<16x16xf32>, vector<16x16xf32> -> vector<16x16xf32>
    %cst_20 = arith.constant 2.500000e-01 : f32
    %43 = vector.broadcast %cst_20 : f32 to vector<16x16xf32>
    %44 = arith.mulf %42, %43 : vector<16x16xf32>
    %45 = vector.broadcast %31 : vector<1x16xf32> to vector<16x16xf32>
    %46 = arith.addf %44, %45 : vector<16x16xf32>
    %cst_21 = arith.constant dense<0xFF800000> : vector<16xf32>
    %47 = vector.multi_reduction <maximumf>, %46, %cst_21 [1] : vector<16x16xf32> to vector<16xf32>
    %48 = vector.shape_cast %47 : vector<16xf32> to vector<16x1xf32>
    %49 = vector.broadcast %48 : vector<16x1xf32> to vector<16x16xf32>
    %50 = arith.subf %46, %49 : vector<16x16xf32>
    %51 = math.exp %50 : vector<16x16xf32>
    %cst_22 = arith.constant dense<0.000000e+00> : vector<16xf32>
    %52 = vector.multi_reduction <add>, %51, %cst_22 [1] : vector<16x16xf32> to vector<16xf32>
    %53 = vector.shape_cast %52 : vector<16xf32> to vector<16x1xf32>
    %54 = tpu.reciprocal %53 {approx = true} : vector<16x1xf32> -> vector<16x1xf32>
    %55 = vector.broadcast %54 : vector<16x1xf32> to vector<16x16xf32>
    %56 = arith.mulf %51, %55 : vector<16x16xf32>
    %cst_23 = arith.constant dense<0.000000e+00> : vector<16x16xf32>
    %57 = tpu.matmul %56, %41, %cst_23 {dimension_numbers = #tpu.dot_dimension_numbers<[1], [0], [0], [1], [0, 0, 1, 1], [], []>} : vector<16x16xf32>, vector<16x16xf32>, vector<16x16xf32> -> vector<16x16xf32>
    %58 = vector.extract_strided_slice %38 {offsets = [0, 16], sizes = [16, 16], strides = [1, 1]} : vector<16x96xf32> to vector<16x16xf32>
    %59 = vector.extract_strided_slice %38 {offsets = [0, 48], sizes = [16, 16], strides = [1, 1]} : vector<16x96xf32> to vector<16x16xf32>
    %60 = vector.extract_strided_slice %38 {offsets = [0, 80], sizes = [16, 16], strides = [1, 1]} : vector<16x96xf32> to vector<16x16xf32>
    %cst_24 = arith.constant dense<0.000000e+00> : vector<16x16xf32>
    %61 = tpu.matmul %58, %59, %cst_24 {dimension_numbers = #tpu.dot_dimension_numbers<[1], [1], [0], [0], [0, 0, 1, 0], [], []>} : vector<16x16xf32>, vector<16x16xf32>, vector<16x16xf32> -> vector<16x16xf32>
    %cst_25 = arith.constant 2.500000e-01 : f32
    %62 = vector.broadcast %cst_25 : f32 to vector<16x16xf32>
    %63 = arith.mulf %61, %62 : vector<16x16xf32>
    %64 = vector.broadcast %31 : vector<1x16xf32> to vector<16x16xf32>
    %65 = arith.addf %63, %64 : vector<16x16xf32>
    %cst_26 = arith.constant dense<0xFF800000> : vector<16xf32>
    %66 = vector.multi_reduction <maximumf>, %65, %cst_26 [1] : vector<16x16xf32> to vector<16xf32>
    %67 = vector.shape_cast %66 : vector<16xf32> to vector<16x1xf32>
    %68 = vector.broadcast %67 : vector<16x1xf32> to vector<16x16xf32>
    %69 = arith.subf %65, %68 : vector<16x16xf32>
    %70 = math.exp %69 : vector<16x16xf32>
    %cst_27 = arith.constant dense<0.000000e+00> : vector<16xf32>
    %71 = vector.multi_reduction <add>, %70, %cst_27 [1] : vector<16x16xf32> to vector<16xf32>
    %72 = vector.shape_cast %71 : vector<16xf32> to vector<16x1xf32>
    %73 = tpu.reciprocal %72 {approx = true} : vector<16x1xf32> -> vector<16x1xf32>
    %74 = vector.broadcast %73 : vector<16x1xf32> to vector<16x16xf32>
    %75 = arith.mulf %70, %74 : vector<16x16xf32>
    %cst_28 = arith.constant dense<0.000000e+00> : vector<16x16xf32>
    %76 = tpu.matmul %75, %60, %cst_28 {dimension_numbers = #tpu.dot_dimension_numbers<[1], [0], [0], [1], [0, 0, 1, 1], [], []>} : vector<16x16xf32>, vector<16x16xf32>, vector<16x16xf32> -> vector<16x16xf32>
    %77 = tpu.concatenate %57, %76 in 1 : vector<16x16xf32>, vector<16x16xf32> -> vector<16x32xf32>
    %c0_29 = arith.constant 0 : index
    %c0_30 = arith.constant 0 : index
    %c0_31 = arith.constant 0 : index
    %78 = vector.load %arg6[%c0_29, %c0_30, %c0_31] : memref<2x32x32xf32, #tpu.memory_space<vmem>>, vector<1x32x32xf32>
    %79 = vector.shape_cast %78 : vector<1x32x32xf32> to vector<32x32xf32>
    %cst_32 = arith.constant dense<0.000000e+00> : vector<16x32xf32>
    %80 = tpu.matmul %77, %79, %cst_32 {dimension_numbers = #tpu.dot_dimension_numbers<[1], [0], [0], [1], [0, 0, 1, 1], [], []>} : vector<16x32xf32>, vector<32x32xf32>, vector<16x32xf32> -> vector<16x32xf32>
    %c0_33 = arith.constant 0 : index
    %c0_34 = arith.constant 0 : index
    %c0_35 = arith.constant 0 : index
    %81 = vector.load %arg7[%c0_33, %c0_34, %c0_35] : memref<2x1x32xf32, #tpu.memory_space<vmem>>, vector<1x1x32xf32>
    %82 = vector.shape_cast %81 : vector<1x1x32xf32> to vector<1x32xf32>
    %83 = vector.broadcast %82 : vector<1x32xf32> to vector<16x32xf32>
    %84 = arith.addf %80, %83 : vector<16x32xf32>
    %85 = arith.addf %84, %25 : vector<16x32xf32>
    %c0_36 = arith.constant 0 : index
    %c0_37 = arith.constant 0 : index
    %c0_38 = arith.constant 0 : index
    %86 = vector.load %arg8[%c0_36, %c0_37, %c0_38] : memref<2x1x32xf32, #tpu.memory_space<vmem>>, vector<1x1x32xf32>
    %87 = vector.shape_cast %86 : vector<1x1x32xf32> to vector<1x32xf32>
    %c0_39 = arith.constant 0 : index
    %c0_40 = arith.constant 0 : index
    %c0_41 = arith.constant 0 : index
    %88 = vector.load %arg9[%c0_39, %c0_40, %c0_41] : memref<2x1x32xf32, #tpu.memory_space<vmem>>, vector<1x1x32xf32>
    %89 = vector.shape_cast %88 : vector<1x1x32xf32> to vector<1x32xf32>
    %cst_42 = arith.constant dense<0.000000e+00> : vector<16xf32>
    %90 = vector.multi_reduction <add>, %85, %cst_42 [1] : vector<16x32xf32> to vector<16xf32>
    %91 = vector.shape_cast %90 : vector<16xf32> to vector<16x1xf32>
    %cst_43 = arith.constant 3.200000e+01 : f32
    %92 = vector.broadcast %cst_43 : f32 to vector<16x1xf32>
    %93 = arith.divf %91, %92 : vector<16x1xf32>
    %94 = vector.broadcast %93 : vector<16x1xf32> to vector<16x32xf32>
    %95 = arith.subf %85, %94 : vector<16x32xf32>
    %96 = arith.mulf %95, %95 : vector<16x32xf32>
    %cst_44 = arith.constant dense<0.000000e+00> : vector<16xf32>
    %97 = vector.multi_reduction <add>, %96, %cst_44 [1] : vector<16x32xf32> to vector<16xf32>
    %98 = vector.shape_cast %97 : vector<16xf32> to vector<16x1xf32>
    %cst_45 = arith.constant 3.200000e+01 : f32
    %99 = vector.broadcast %cst_45 : f32 to vector<16x1xf32>
    %100 = arith.divf %98, %99 : vector<16x1xf32>
    %101 = vector.broadcast %93 : vector<16x1xf32> to vector<16x32xf32>
    %102 = arith.subf %85, %101 : vector<16x32xf32>
    %cst_46 = arith.constant 9.99999996E-13 : f32
    %103 = vector.broadcast %cst_46 : f32 to vector<16x1xf32>
    %104 = arith.addf %100, %103 : vector<16x1xf32>
    %105 = math.rsqrt %104 : vector<16x1xf32>
    %106 = vector.broadcast %105 : vector<16x1xf32> to vector<16x32xf32>
    %107 = arith.mulf %102, %106 : vector<16x32xf32>
    %108 = vector.broadcast %87 : vector<1x32xf32> to vector<16x32xf32>
    %109 = arith.mulf %107, %108 : vector<16x32xf32>
    %110 = vector.broadcast %89 : vector<1x32xf32> to vector<16x32xf32>
    %111 = arith.addf %109, %110 : vector<16x32xf32>
    %c0_47 = arith.constant 0 : index
    %c0_48 = arith.constant 0 : index
    %c0_49 = arith.constant 0 : index
    %112 = vector.load %arg10[%c0_47, %c0_48, %c0_49] : memref<2x32x64xf32, #tpu.memory_space<vmem>>, vector<1x32x64xf32>
    %113 = vector.shape_cast %112 : vector<1x32x64xf32> to vector<32x64xf32>
    %cst_50 = arith.constant dense<0.000000e+00> : vector<16x64xf32>
    %114 = tpu.matmul %111, %113, %cst_50 {dimension_numbers = #tpu.dot_dimension_numbers<[1], [0], [0], [1], [0, 0, 1, 1], [], []>} : vector<16x32xf32>, vector<32x64xf32>, vector<16x64xf32> -> vector<16x64xf32>
    %c0_51 = arith.constant 0 : index
    %c0_52 = arith.constant 0 : index
    %c0_53 = arith.constant 0 : index
    %115 = vector.load %arg11[%c0_51, %c0_52, %c0_53] : memref<2x1x64xf32, #tpu.memory_space<vmem>>, vector<1x1x64xf32>
    %116 = vector.shape_cast %115 : vector<1x1x64xf32> to vector<1x64xf32>
    %117 = vector.broadcast %116 : vector<1x64xf32> to vector<16x64xf32>
    %118 = arith.addf %114, %117 : vector<16x64xf32>
    %119 = arith.mulf %118, %118 : vector<16x64xf32>
    %120 = arith.mulf %118, %119 : vector<16x64xf32>
    %cst_54 = arith.constant 4.471500e-02 : f32
    %121 = vector.broadcast %cst_54 : f32 to vector<16x64xf32>
    %122 = arith.mulf %121, %120 : vector<16x64xf32>
    %123 = arith.addf %118, %122 : vector<16x64xf32>
    %cst_55 = arith.constant 0.797884583 : f32
    %124 = vector.broadcast %cst_55 : f32 to vector<16x64xf32>
    %125 = arith.mulf %124, %123 : vector<16x64xf32>
    %126 = math.tanh %125 : vector<16x64xf32>
    %cst_56 = arith.constant 1.000000e+00 : f32
    %127 = vector.broadcast %cst_56 : f32 to vector<16x64xf32>
    %128 = arith.addf %127, %126 : vector<16x64xf32>
    %cst_57 = arith.constant 5.000000e-01 : f32
    %129 = vector.broadcast %cst_57 : f32 to vector<16x64xf32>
    %130 = arith.mulf %129, %128 : vector<16x64xf32>
    %131 = arith.mulf %118, %130 : vector<16x64xf32>
    %c0_58 = arith.constant 0 : index
    %c0_59 = arith.constant 0 : index
    %c0_60 = arith.constant 0 : index
    %132 = vector.load %arg12[%c0_58, %c0_59, %c0_60] : memref<2x64x32xf32, #tpu.memory_space<vmem>>, vector<1x64x32xf32>
    %133 = vector.shape_cast %132 : vector<1x64x32xf32> to vector<64x32xf32>
    %cst_61 = arith.constant dense<0.000000e+00> : vector<16x32xf32>
    %134 = tpu.matmul %131, %133, %cst_61 {dimension_numbers = #tpu.dot_dimension_numbers<[1], [0], [0], [1], [0, 0, 1, 1], [], []>} : vector<16x64xf32>, vector<64x32xf32>, vector<16x32xf32> -> vector<16x32xf32>
    %c0_62 = arith.constant 0 : index
    %c0_63 = arith.constant 0 : index
    %c0_64 = arith.constant 0 : index
    %135 = vector.load %arg13[%c0_62, %c0_63, %c0_64] : memref<2x1x32xf32, #tpu.memory_space<vmem>>, vector<1x1x32xf32>
    %136 = vector.shape_cast %135 : vector<1x1x32xf32> to vector<1x32xf32>
    %137 = vector.broadcast %136 : vector<1x32xf32> to vector<16x32xf32>
    %138 = arith.addf %134, %137 : vector<16x32xf32>
    %139 = arith.addf %138, %111 : vector<16x32xf32>
    %c0_65 = arith.constant 0 : index
    %c0_66 = arith.constant 0 : index
    %c0_67 = arith.constant 0 : index
    %140 = vector.load %arg14[%c0_65, %c0_66, %c0_67] : memref<2x1x32xf32, #tpu.memory_space<vmem>>, vector<1x1x32xf32>
    %141 = vector.shape_cast %140 : vector<1x1x32xf32> to vector<1x32xf32>
    %c0_68 = arith.constant 0 : index
    %c0_69 = arith.constant 0 : index
    %c0_70 = arith.constant 0 : index
    %142 = vector.load %arg15[%c0_68, %c0_69, %c0_70] : memref<2x1x32xf32, #tpu.memory_space<vmem>>, vector<1x1x32xf32>
    %143 = vector.shape_cast %142 : vector<1x1x32xf32> to vector<1x32xf32>
    %cst_71 = arith.constant dense<0.000000e+00> : vector<16xf32>
    %144 = vector.multi_reduction <add>, %139, %cst_71 [1] : vector<16x32xf32> to vector<16xf32>
    %145 = vector.shape_cast %144 : vector<16xf32> to vector<16x1xf32>
    %cst_72 = arith.constant 3.200000e+01 : f32
    %146 = vector.broadcast %cst_72 : f32 to vector<16x1xf32>
    %147 = arith.divf %145, %146 : vector<16x1xf32>
    %148 = vector.broadcast %147 : vector<16x1xf32> to vector<16x32xf32>
    %149 = arith.subf %139, %148 : vector<16x32xf32>
    %150 = arith.mulf %149, %149 : vector<16x32xf32>
    %cst_73 = arith.constant dense<0.000000e+00> : vector<16xf32>
    %151 = vector.multi_reduction <add>, %150, %cst_73 [1] : vector<16x32xf32> to vector<16xf32>
    %152 = vector.shape_cast %151 : vector<16xf32> to vector<16x1xf32>
    %cst_74 = arith.constant 3.200000e+01 : f32
    %153 = vector.broadcast %cst_74 : f32 to vector<16x1xf32>
    %154 = arith.divf %152, %153 : vector<16x1xf32>
    %155 = vector.broadcast %147 : vector<16x1xf32> to vector<16x32xf32>
    %156 = arith.subf %139, %155 : vector<16x32xf32>
    %cst_75 = arith.constant 9.99999996E-13 : f32
    %157 = vector.broadcast %cst_75 : f32 to vector<16x1xf32>
    %158 = arith.addf %154, %157 : vector<16x1xf32>
    %159 = math.rsqrt %158 : vector<16x1xf32>
    %160 = vector.broadcast %159 : vector<16x1xf32> to vector<16x32xf32>
    %161 = arith.mulf %156, %160 : vector<16x32xf32>
    %162 = vector.broadcast %141 : vector<1x32xf32> to vector<16x32xf32>
    %163 = arith.mulf %161, %162 : vector<16x32xf32>
    %164 = vector.broadcast %143 : vector<1x32xf32> to vector<16x32xf32>
    %165 = arith.addf %163, %164 : vector<16x32xf32>
    %c1 = arith.constant 1 : index
    %c0_76 = arith.constant 0 : index
    %c0_77 = arith.constant 0 : index
    %166 = vector.load %arg4[%c1, %c0_76, %c0_77] : memref<2x32x96xf32, #tpu.memory_space<vmem>>, vector<1x32x96xf32>
    %167 = vector.shape_cast %166 : vector<1x32x96xf32> to vector<32x96xf32>
    %cst_78 = arith.constant dense<0.000000e+00> : vector<16x96xf32>
    %168 = tpu.matmul %165, %167, %cst_78 {dimension_numbers = #tpu.dot_dimension_numbers<[1], [0], [0], [1], [0, 0, 1, 1], [], []>} : vector<16x32xf32>, vector<32x96xf32>, vector<16x96xf32> -> vector<16x96xf32>
    %c1_79 = arith.constant 1 : index
    %c0_80 = arith.constant 0 : index
    %c0_81 = arith.constant 0 : index
    %169 = vector.load %arg5[%c1_79, %c0_80, %c0_81] : memref<2x1x96xf32, #tpu.memory_space<vmem>>, vector<1x1x96xf32>
    %170 = vector.shape_cast %169 : vector<1x1x96xf32> to vector<1x96xf32>
    %171 = vector.broadcast %170 : vector<1x96xf32> to vector<16x96xf32>
    %172 = arith.addf %168, %171 : vector<16x96xf32>
    %173 = vector.extract_strided_slice %172 {offsets = [0, 0], sizes = [16, 16], strides = [1, 1]} : vector<16x96xf32> to vector<16x16xf32>
    %174 = vector.extract_strided_slice %172 {offsets = [0, 32], sizes = [16, 16], strides = [1, 1]} : vector<16x96xf32> to vector<16x16xf32>
    %175 = vector.extract_strided_slice %172 {offsets = [0, 64], sizes = [16, 16], strides = [1, 1]} : vector<16x96xf32> to vector<16x16xf32>
    %cst_82 = arith.constant dense<0.000000e+00> : vector<16x16xf32>
    %176 = tpu.matmul %173, %174, %cst_82 {dimension_numbers = #tpu.dot_dimension_numbers<[1], [1], [0], [0], [0, 0, 1, 0], [], []>} : vector<16x16xf32>, vector<16x16xf32>, vector<16x16xf32> -> vector<16x16xf32>
    %cst_83 = arith.constant 2.500000e-01 : f32
    %177 = vector.broadcast %cst_83 : f32 to vector<16x16xf32>
    %178 = arith.mulf %176, %177 : vector<16x16xf32>
    %179 = vector.broadcast %31 : vector<1x16xf32> to vector<16x16xf32>
    %180 = arith.addf %178, %179 : vector<16x16xf32>
    %cst_84 = arith.constant dense<0xFF800000> : vector<16xf32>
    %181 = vector.multi_reduction <maximumf>, %180, %cst_84 [1] : vector<16x16xf32> to vector<16xf32>
    %182 = vector.shape_cast %181 : vector<16xf32> to vector<16x1xf32>
    %183 = vector.broadcast %182 : vector<16x1xf32> to vector<16x16xf32>
    %184 = arith.subf %180, %183 : vector<16x16xf32>
    %185 = math.exp %184 : vector<16x16xf32>
    %cst_85 = arith.constant dense<0.000000e+00> : vector<16xf32>
    %186 = vector.multi_reduction <add>, %185, %cst_85 [1] : vector<16x16xf32> to vector<16xf32>
    %187 = vector.shape_cast %186 : vector<16xf32> to vector<16x1xf32>
    %188 = tpu.reciprocal %187 {approx = true} : vector<16x1xf32> -> vector<16x1xf32>
    %189 = vector.broadcast %188 : vector<16x1xf32> to vector<16x16xf32>
    %190 = arith.mulf %185, %189 : vector<16x16xf32>
    %cst_86 = arith.constant dense<0.000000e+00> : vector<16x16xf32>
    %191 = tpu.matmul %190, %175, %cst_86 {dimension_numbers = #tpu.dot_dimension_numbers<[1], [0], [0], [1], [0, 0, 1, 1], [], []>} : vector<16x16xf32>, vector<16x16xf32>, vector<16x16xf32> -> vector<16x16xf32>
    %192 = vector.extract_strided_slice %172 {offsets = [0, 16], sizes = [16, 16], strides = [1, 1]} : vector<16x96xf32> to vector<16x16xf32>
    %193 = vector.extract_strided_slice %172 {offsets = [0, 48], sizes = [16, 16], strides = [1, 1]} : vector<16x96xf32> to vector<16x16xf32>
    %194 = vector.extract_strided_slice %172 {offsets = [0, 80], sizes = [16, 16], strides = [1, 1]} : vector<16x96xf32> to vector<16x16xf32>
    %cst_87 = arith.constant dense<0.000000e+00> : vector<16x16xf32>
    %195 = tpu.matmul %192, %193, %cst_87 {dimension_numbers = #tpu.dot_dimension_numbers<[1], [1], [0], [0], [0, 0, 1, 0], [], []>} : vector<16x16xf32>, vector<16x16xf32>, vector<16x16xf32> -> vector<16x16xf32>
    %cst_88 = arith.constant 2.500000e-01 : f32
    %196 = vector.broadcast %cst_88 : f32 to vector<16x16xf32>
    %197 = arith.mulf %195, %196 : vector<16x16xf32>
    %198 = vector.broadcast %31 : vector<1x16xf32> to vector<16x16xf32>
    %199 = arith.addf %197, %198 : vector<16x16xf32>
    %cst_89 = arith.constant dense<0xFF800000> : vector<16xf32>
    %200 = vector.multi_reduction <maximumf>, %199, %cst_89 [1] : vector<16x16xf32> to vector<16xf32>
    %201 = vector.shape_cast %200 : vector<16xf32> to vector<16x1xf32>
    %202 = vector.broadcast %201 : vector<16x1xf32> to vector<16x16xf32>
    %203 = arith.subf %199, %202 : vector<16x16xf32>
    %204 = math.exp %203 : vector<16x16xf32>
    %cst_90 = arith.constant dense<0.000000e+00> : vector<16xf32>
    %205 = vector.multi_reduction <add>, %204, %cst_90 [1] : vector<16x16xf32> to vector<16xf32>
    %206 = vector.shape_cast %205 : vector<16xf32> to vector<16x1xf32>
    %207 = tpu.reciprocal %206 {approx = true} : vector<16x1xf32> -> vector<16x1xf32>
    %208 = vector.broadcast %207 : vector<16x1xf32> to vector<16x16xf32>
    %209 = arith.mulf %204, %208 : vector<16x16xf32>
    %cst_91 = arith.constant dense<0.000000e+00> : vector<16x16xf32>
    %210 = tpu.matmul %209, %194, %cst_91 {dimension_numbers = #tpu.dot_dimension_numbers<[1], [0], [0], [1], [0, 0, 1, 1], [], []>} : vector<16x16xf32>, vector<16x16xf32>, vector<16x16xf32> -> vector<16x16xf32>
    %211 = tpu.concatenate %191, %210 in 1 : vector<16x16xf32>, vector<16x16xf32> -> vector<16x32xf32>
    %c1_92 = arith.constant 1 : index
    %c0_93 = arith.constant 0 : index
    %c0_94 = arith.constant 0 : index
    %212 = vector.load %arg6[%c1_92, %c0_93, %c0_94] : memref<2x32x32xf32, #tpu.memory_space<vmem>>, vector<1x32x32xf32>
    %213 = vector.shape_cast %212 : vector<1x32x32xf32> to vector<32x32xf32>
    %cst_95 = arith.constant dense<0.000000e+00> : vector<16x32xf32>
    %214 = tpu.matmul %211, %213, %cst_95 {dimension_numbers = #tpu.dot_dimension_numbers<[1], [0], [0], [1], [0, 0, 1, 1], [], []>} : vector<16x32xf32>, vector<32x32xf32>, vector<16x32xf32> -> vector<16x32xf32>
    %c1_96 = arith.constant 1 : index
    %c0_97 = arith.constant 0 : index
    %c0_98 = arith.constant 0 : index
    %215 = vector.load %arg7[%c1_96, %c0_97, %c0_98] : memref<2x1x32xf32, #tpu.memory_space<vmem>>, vector<1x1x32xf32>
    %216 = vector.shape_cast %215 : vector<1x1x32xf32> to vector<1x32xf32>
    %217 = vector.broadcast %216 : vector<1x32xf32> to vector<16x32xf32>
    %218 = arith.addf %214, %217 : vector<16x32xf32>
    %219 = arith.addf %218, %165 : vector<16x32xf32>
    %c1_99 = arith.constant 1 : index
    %c0_100 = arith.constant 0 : index
    %c0_101 = arith.constant 0 : index
    %220 = vector.load %arg8[%c1_99, %c0_100, %c0_101] : memref<2x1x32xf32, #tpu.memory_space<vmem>>, vector<1x1x32xf32>
    %221 = vector.shape_cast %220 : vector<1x1x32xf32> to vector<1x32xf32>
    %c1_102 = arith.constant 1 : index
    %c0_103 = arith.constant 0 : index
    %c0_104 = arith.constant 0 : index
    %222 = vector.load %arg9[%c1_102, %c0_103, %c0_104] : memref<2x1x32xf32, #tpu.memory_space<vmem>>, vector<1x1x32xf32>
    %223 = vector.shape_cast %222 : vector<1x1x32xf32> to vector<1x32xf32>
    %cst_105 = arith.constant dense<0.000000e+00> : vector<16xf32>
    %224 = vector.multi_reduction <add>, %219, %cst_105 [1] : vector<16x32xf32> to vector<16xf32>
    %225 = vector.shape_cast %224 : vector<16xf32> to vector<16x1xf32>
    %cst_106 = arith.constant 3.200000e+01 : f32
    %226 = vector.broadcast %cst_106 : f32 to vector<16x1xf32>
    %227 = arith.divf %225, %226 : vector<16x1xf32>
    %228 = vector.broadcast %227 : vector<16x1xf32> to vector<16x32xf32>
    %229 = arith.subf %219, %228 : vector<16x32xf32>
    %230 = arith.mulf %229, %229 : vector<16x32xf32>
    %cst_107 = arith.constant dense<0.000000e+00> : vector<16xf32>
    %231 = vector.multi_reduction <add>, %230, %cst_107 [1] : vector<16x32xf32> to vector<16xf32>
    %232 = vector.shape_cast %231 : vector<16xf32> to vector<16x1xf32>
    %cst_108 = arith.constant 3.200000e+01 : f32
    %233 = vector.broadcast %cst_108 : f32 to vector<16x1xf32>
    %234 = arith.divf %232, %233 : vector<16x1xf32>
    %235 = vector.broadcast %227 : vector<16x1xf32> to vector<16x32xf32>
    %236 = arith.subf %219, %235 : vector<16x32xf32>
    %cst_109 = arith.constant 9.99999996E-13 : f32
    %237 = vector.broadcast %cst_109 : f32 to vector<16x1xf32>
    %238 = arith.addf %234, %237 : vector<16x1xf32>
    %239 = math.rsqrt %238 : vector<16x1xf32>
    %240 = vector.broadcast %239 : vector<16x1xf32> to vector<16x32xf32>
    %241 = arith.mulf %236, %240 : vector<16x32xf32>
    %242 = vector.broadcast %221 : vector<1x32xf32> to vector<16x32xf32>
    %243 = arith.mulf %241, %242 : vector<16x32xf32>
    %244 = vector.broadcast %223 : vector<1x32xf32> to vector<16x32xf32>
    %245 = arith.addf %243, %244 : vector<16x32xf32>
    %c1_110 = arith.constant 1 : index
    %c0_111 = arith.constant 0 : index
    %c0_112 = arith.constant 0 : index
    %246 = vector.load %arg10[%c1_110, %c0_111, %c0_112] : memref<2x32x64xf32, #tpu.memory_space<vmem>>, vector<1x32x64xf32>
    %247 = vector.shape_cast %246 : vector<1x32x64xf32> to vector<32x64xf32>
    %cst_113 = arith.constant dense<0.000000e+00> : vector<16x64xf32>
    %248 = tpu.matmul %245, %247, %cst_113 {dimension_numbers = #tpu.dot_dimension_numbers<[1], [0], [0], [1], [0, 0, 1, 1], [], []>} : vector<16x32xf32>, vector<32x64xf32>, vector<16x64xf32> -> vector<16x64xf32>
    %c1_114 = arith.constant 1 : index
    %c0_115 = arith.constant 0 : index
    %c0_116 = arith.constant 0 : index
    %249 = vector.load %arg11[%c1_114, %c0_115, %c0_116] : memref<2x1x64xf32, #tpu.memory_space<vmem>>, vector<1x1x64xf32>
    %250 = vector.shape_cast %249 : vector<1x1x64xf32> to vector<1x64xf32>
    %251 = vector.broadcast %250 : vector<1x64xf32> to vector<16x64xf32>
    %252 = arith.addf %248, %251 : vector<16x64xf32>
    %253 = arith.mulf %252, %252 : vector<16x64xf32>
    %254 = arith.mulf %252, %253 : vector<16x64xf32>
    %cst_117 = arith.constant 4.471500e-02 : f32
    %255 = vector.broadcast %cst_117 : f32 to vector<16x64xf32>
    %256 = arith.mulf %255, %254 : vector<16x64xf32>
    %257 = arith.addf %252, %256 : vector<16x64xf32>
    %cst_118 = arith.constant 0.797884583 : f32
    %258 = vector.broadcast %cst_118 : f32 to vector<16x64xf32>
    %259 = arith.mulf %258, %257 : vector<16x64xf32>
    %260 = math.tanh %259 : vector<16x64xf32>
    %cst_119 = arith.constant 1.000000e+00 : f32
    %261 = vector.broadcast %cst_119 : f32 to vector<16x64xf32>
    %262 = arith.addf %261, %260 : vector<16x64xf32>
    %cst_120 = arith.constant 5.000000e-01 : f32
    %263 = vector.broadcast %cst_120 : f32 to vector<16x64xf32>
    %264 = arith.mulf %263, %262 : vector<16x64xf32>
    %265 = arith.mulf %252, %264 : vector<16x64xf32>
    %c1_121 = arith.constant 1 : index
    %c0_122 = arith.constant 0 : index
    %c0_123 = arith.constant 0 : index
    %266 = vector.load %arg12[%c1_121, %c0_122, %c0_123] : memref<2x64x32xf32, #tpu.memory_space<vmem>>, vector<1x64x32xf32>
    %267 = vector.shape_cast %266 : vector<1x64x32xf32> to vector<64x32xf32>
    %cst_124 = arith.constant dense<0.000000e+00> : vector<16x32xf32>
    %268 = tpu.matmul %265, %267, %cst_124 {dimension_numbers = #tpu.dot_dimension_numbers<[1], [0], [0], [1], [0, 0, 1, 1], [], []>} : vector<16x64xf32>, vector<64x32xf32>, vector<16x32xf32> -> vector<16x32xf32>
    %c1_125 = arith.constant 1 : index
    %c0_126 = arith.constant 0 : index
    %c0_127 = arith.constant 0 : index
    %269 = vector.load %arg13[%c1_125, %c0_126, %c0_127] : memref<2x1x32xf32, #tpu.memory_space<vmem>>, vector<1x1x32xf32>
    %270 = vector.shape_cast %269 : vector<1x1x32xf32> to vector<1x32xf32>
    %271 = vector.broadcast %270 : vector<1x32xf32> to vector<16x32xf32>
    %272 = arith.addf %268, %271 : vector<16x32xf32>
    %273 = arith.addf %272, %245 : vector<16x32xf32>
    %c1_128 = arith.constant 1 : index
    %c0_129 = arith.constant 0 : index
    %c0_130 = arith.constant 0 : index
    %274 = vector.load %arg14[%c1_128, %c0_129, %c0_130] : memref<2x1x32xf32, #tpu.memory_space<vmem>>, vector<1x1x32xf32>
    %275 = vector.shape_cast %274 : vector<1x1x32xf32> to vector<1x32xf32>
    %c1_131 = arith.constant 1 : index
    %c0_132 = arith.constant 0 : index
    %c0_133 = arith.constant 0 : index
    %276 = vector.load %arg15[%c1_131, %c0_132, %c0_133] : memref<2x1x32xf32, #tpu.memory_space<vmem>>, vector<1x1x32xf32>
    %277 = vector.shape_cast %276 : vector<1x1x32xf32> to vector<1x32xf32>
    %cst_134 = arith.constant dense<0.000000e+00> : vector<16xf32>
    %278 = vector.multi_reduction <add>, %273, %cst_134 [1] : vector<16x32xf32> to vector<16xf32>
    %279 = vector.shape_cast %278 : vector<16xf32> to vector<16x1xf32>
    %cst_135 = arith.constant 3.200000e+01 : f32
    %280 = vector.broadcast %cst_135 : f32 to vector<16x1xf32>
    %281 = arith.divf %279, %280 : vector<16x1xf32>
    %282 = vector.broadcast %281 : vector<16x1xf32> to vector<16x32xf32>
    %283 = arith.subf %273, %282 : vector<16x32xf32>
    %284 = arith.mulf %283, %283 : vector<16x32xf32>
    %cst_136 = arith.constant dense<0.000000e+00> : vector<16xf32>
    %285 = vector.multi_reduction <add>, %284, %cst_136 [1] : vector<16x32xf32> to vector<16xf32>
    %286 = vector.shape_cast %285 : vector<16xf32> to vector<16x1xf32>
    %cst_137 = arith.constant 3.200000e+01 : f32
    %287 = vector.broadcast %cst_137 : f32 to vector<16x1xf32>
    %288 = arith.divf %286, %287 : vector<16x1xf32>
    %289 = vector.broadcast %281 : vector<16x1xf32> to vector<16x32xf32>
    %290 = arith.subf %273, %289 : vector<16x32xf32>
    %cst_138 = arith.constant 9.99999996E-13 : f32
    %291 = vector.broadcast %cst_138 : f32 to vector<16x1xf32>
    %292 = arith.addf %288, %291 : vector<16x1xf32>
    %293 = math.rsqrt %292 : vector<16x1xf32>
    %294 = vector.broadcast %293 : vector<16x1xf32> to vector<16x32xf32>
    %295 = arith.mulf %290, %294 : vector<16x32xf32>
    %296 = vector.broadcast %275 : vector<1x32xf32> to vector<16x32xf32>
    %297 = arith.mulf %295, %296 : vector<16x32xf32>
    %298 = vector.broadcast %277 : vector<1x32xf32> to vector<16x32xf32>
    %299 = arith.addf %297, %298 : vector<16x32xf32>
    %c0_139 = arith.constant 0 : index
    %c0_140 = arith.constant 0 : index
    %c0_141 = arith.constant 0 : index
    %300 = vector.load %arg18[%c0_139, %c0_140, %c0_141] : memref<1x16x32xf32, #tpu.memory_space<vmem>>, vector<1x16x32xf32>
    %301 = vector.shape_cast %300 : vector<1x16x32xf32> to vector<16x32xf32>
    %302 = vector.shape_cast %299 : vector<16x32xf32> to vector<1x16x32xf32>
    tpu.vector_store %arg18[%c0_139, %c0_140, %c0_141], %302 {strides = array<i32>} : memref<1x16x32xf32, #tpu.memory_space<vmem>>, vector<1x16x32xf32>,
    %303 = vector.extract_strided_slice %299 {offsets = [0, 0], sizes = [1, 32], strides = [1, 1]} : vector<16x32xf32> to vector<1x32xf32>
    %c0_142 = arith.constant 0 : index
    %c0_143 = arith.constant 0 : index
    %304 = vector.load %arg16[%c0_142, %c0_143] : memref<32x32xf32, #tpu.memory_space<vmem>>, vector<32x32xf32>
    %cst_144 = arith.constant dense<0.000000e+00> : vector<1x32xf32>
    %305 = tpu.matmul %303, %304, %cst_144 {dimension_numbers = #tpu.dot_dimension_numbers<[1], [0], [0], [1], [0, 0, 1, 1], [], []>} : vector<1x32xf32>, vector<32x32xf32>, vector<1x32xf32> -> vector<1x32xf32>
    %c0_145 = arith.constant 0 : index
    %c0_146 = arith.constant 0 : index
    %306 = vector.load %arg17[%c0_145, %c0_146] : memref<1x32xf32, #tpu.memory_space<vmem>>, vector<1x32xf32>
    %307 = arith.addf %305, %306 : vector<1x32xf32>
    %308 = math.tanh %307 : vector<1x32xf32>
    %c0_147 = arith.constant 0 : index
    %c0_148 = arith.constant 0 : index
    %c0_149 = arith.constant 0 : index
    %309 = vector.load %arg19[%c0_147, %c0_148, %c0_149] : memref<1x1x32xf32, #tpu.memory_space<vmem>>, vector<1x1x32xf32>
    %310 = vector.shape_cast %309 : vector<1x1x32xf32> to vector<1x32xf32>
    %311 = vector.shape_cast %308 : vector<1x32xf32> to vector<1x1x32xf32>
    tpu.vector_store %arg19[%c0_147, %c0_148, %c0_149], %311 {strides = array<i32>} : memref<1x1x32xf32, #tpu.memory_space<vmem>>, vector<1x1x32xf32>,
    return
  }
  func.func @transform_0(%arg0: i32) -> (i32, i32, i32) {
    %c0_i32 = arith.constant 0 : i32
    %c0_i32_0 = arith.constant 0 : i32
    %c0_i32_1 = arith.constant 0 : i32
    return %arg0, %c0_i32, %c0_i32_0 : i32, i32, i32
  }
  func.func @transform_1(%arg0: i32) -> (i32, i32) {
    %c0_i32 = arith.constant 0 : i32
    %c0_i32_0 = arith.constant 0 : i32
    %c0_i32_1 = arith.constant 0 : i32
    return %c0_i32, %c0_i32_0 : i32, i32
  }
  func.func @transform_2(%arg0: i32) -> (i32, i32) {
    %c0_i32 = arith.constant 0 : i32
    %c0_i32_0 = arith.constant 0 : i32
    %c0_i32_1 = arith.constant 0 : i32
    return %c0_i32, %c0_i32_0 : i32, i32
  }
  func.func @transform_3(%arg0: i32) -> (i32, i32, i32) {
    %c0_i32 = arith.constant 0 : i32
    %c0_i32_0 = arith.constant 0 : i32
    %c0_i32_1 = arith.constant 0 : i32
    %c0_i32_2 = arith.constant 0 : i32
    return %c0_i32, %c0_i32_0, %c0_i32_1 : i32, i32, i32
  }
  func.func @transform_4(%arg0: i32) -> (i32, i32, i32) {
    %c0_i32 = arith.constant 0 : i32
    %c0_i32_0 = arith.constant 0 : i32
    %c0_i32_1 = arith.constant 0 : i32
    %c0_i32_2 = arith.constant 0 : i32
    return %c0_i32, %c0_i32_0, %c0_i32_1 : i32, i32, i32
  }
  func.func @transform_5(%arg0: i32) -> (i32, i32, i32) {
    %c0_i32 = arith.constant 0 : i32
    %c0_i32_0 = arith.constant 0 : i32
    %c0_i32_1 = arith.constant 0 : i32
    %c0_i32_2 = arith.constant 0 : i32
    return %c0_i32, %c0_i32_0, %c0_i32_1 : i32, i32, i32
  }
  func.func @transform_6(%arg0: i32) -> (i32, i32, i32) {
    %c0_i32 = arith.constant 0 : i32
    %c0_i32_0 = arith.constant 0 : i32
    %c0_i32_1 = arith.constant 0 : i32
    %c0_i32_2 = arith.constant 0 : i32
    return %c0_i32, %c0_i32_0, %c0_i32_1 : i32, i32, i32
  }
  func.func @transform_7(%arg0: i32) -> (i32, i32, i32) {
    %c0_i32 = arith.constant 0 : i32
    %c0_i32_0 = arith.constant 0 : i32
    %c0_i32_1 = arith.constant 0 : i32
    %c0_i32_2 = arith.constant 0 : i32
    return %c0_i32, %c0_i32_0, %c0_i32_1 : i32, i32, i32
  }
  func.func @transform_8(%arg0: i32) -> (i32, i32, i32) {
    %c0_i32 = arith.constant 0 : i32
    %c0_i32_0 = arith.constant 0 : i32
    %c0_i32_1 = arith.constant 0 : i32
    %c0_i32_2 = arith.constant 0 : i32
    return %c0_i32, %c0_i32_0, %c0_i32_1 : i32, i32, i32
  }
  func.func @transform_9(%arg0: i32) -> (i32, i32, i32) {
    %c0_i32 = arith.constant 0 : i32
    %c0_i32_0 = arith.constant 0 : i32
    %c0_i32_1 = arith.constant 0 : i32
    %c0_i32_2 = arith.constant 0 : i32
    return %c0_i32, %c0_i32_0, %c0_i32_1 : i32, i32, i32
  }
  func.func @transform_10(%arg0: i32) -> (i32, i32, i32) {
    %c0_i32 = arith.constant 0 : i32
    %c0_i32_0 = arith.constant 0 : i32
    %c0_i32_1 = arith.constant 0 : i32
    %c0_i32_2 = arith.constant 0 : i32
    return %c0_i32, %c0_i32_0, %c0_i32_1 : i32, i32, i32
  }
  func.func @transform_11(%arg0: i32) -> (i32, i32, i32) {
    %c0_i32 = arith.constant 0 : i32
    %c0_i32_0 = arith.constant 0 : i32
    %c0_i32_1 = arith.constant 0 : i32
    %c0_i32_2 = arith.constant 0 : i32
    return %c0_i32, %c0_i32_0, %c0_i32_1 : i32, i32, i32
  }
  func.func @transform_12(%arg0: i32) -> (i32, i32, i32) {
    %c0_i32 = arith.constant 0 : i32
    %c0_i32_0 = arith.constant 0 : i32
    %c0_i32_1 = arith.constant 0 : i32
    %c0_i32_2 = arith.constant 0 : i32
    return %c0_i32, %c0_i32_0, %c0_i32_1 : i32, i32, i32
  }
  func.func @transform_13(%arg0: i32) -> (i32, i32, i32) {
    %c0_i32 = arith.constant 0 : i32
    %c0_i32_0 = arith.constant 0 : i32
    %c0_i32_1 = arith.constant 0 : i32
    %c0_i32_2 = arith.constant 0 : i32
    return %c0_i32, %c0_i32_0, %c0_i32_1 : i32, i32, i32
  }
  func.func @transform_14(%arg0: i32) -> (i32, i32, i32) {
    %c0_i32 = arith.constant 0 : i32
    %c0_i32_0 = arith.constant 0 : i32
    %c0_i32_1 = arith.constant 0 : i32
    %c0_i32_2 = arith.constant 0 : i32
    return %c0_i32, %c0_i32_0, %c0_i32_1 : i32, i32, i32
  }
  func.func @transform_15(%arg0: i32) -> (i32, i32) {
    %c0_i32 = arith.constant 0 : i32
    %c0_i32_0 = arith.constant 0 : i32
    %c0_i32_1 = arith.constant 0 : i32
    return %c0_i32, %c0_i32_0 : i32, i32
  }
  func.func @transform_16(%arg0: i32) -> (i32, i32) {
    %c0_i32 = arith.constant 0 : i32
    %c0_i32_0 = arith.constant 0 : i32
    %c0_i32_1 = arith.constant 0 : i32
    return %c0_i32, %c0_i32_0 : i32, i32
  }
  func.func @transform_17(%arg0: i32) -> (i32, i32, i32) {
    %c0_i32 = arith.constant 0 : i32
    %c0_i32_0 = arith.constant 0 : i32
    %c0_i32_1 = arith.constant 0 : i32
    return %arg0, %c0_i32, %c0_i32_0 : i32, i32, i32
  }
  func.func @transform_18(%arg0: i32) -> (i32, i32, i32) {
    %c0_i32 = arith.constant 0 : i32
    %c0_i32_0 = arith.constant 0 : i32
    %c0_i32_1 = arith.constant 0 : i32
    return %arg0, %c0_i32, %c0_i32_0 : i32, i32, i32
  }
}

</mosaic_0001>

<bundles_post_ra>
// kernel: tpu_custom_call.1
= control target key start
LH: loop header
LB: loop body
LE: loop exit
PB: predicated region body
PF: predicated region fallthrough
CT: control target
= control target key end

     0   :  { %s4586_s0 = inlined_call_operand.hbm [shape: f32[2,16,32], index: 0, kind: input, shape index: {}]   ;;  %s4587_s1 = inlined_call_operand.hbm [shape: f32[1,32], index: 1, kind: input, shape index: {}]   ;;  %s4588_s2 = inlined_call_operand.hbm [shape: f32[1,32], index: 2, kind: input, shape index: {}]   ;;  %s4589_s3 = inlined_call_operand.vmem [shape: f32[2,32,96], index: 3, kind: input, shape index: {}]   ;;  %s4590_s4 = inlined_call_operand.vmem [shape: f32[2,1,96], index: 4, kind: input, shape index: {}]   ;;  %s4591_s5 = inlined_call_operand.vmem [shape: f32[2,32,32], index: 5, kind: input, shape index: {}]   ;;  %s4592_s6 = inlined_call_operand.hbm [shape: f32[2,1,32], index: 6, kind: input, shape index: {}]   ;;  %s4593_s7 = inlined_call_operand.hbm [shape: f32[2,1,32], index: 7, kind: input, shape index: {}]   ;;  %s4594_s8 = inlined_call_operand.hbm [shape: f32[2,1,32], index: 8, kind: input, shape index: {}]   ;;  %s4595_s9 = inlined_call_operand.vmem [shape: f32[2,32,64], index: 9, kind: input, shape index: {}]   ;;  %s4596_s10 = inlined_call_operand.vmem [shape: f32[2,1,64], index: 10, kind: input, shape index: {}]   ;;  %s4597_s11 = inlined_call_operand.vmem [shape: f32[2,64,32], index: 11, kind: input, shape index: {}]   ;;  %s4598_s12 = inlined_call_operand.vmem [shape: f32[2,1,32], index: 12, kind: input, shape index: {}]   ;;  %s4599_s13 = inlined_call_operand.vmem [shape: f32[2,1,32], index: 13, kind: input, shape index: {}]   ;;  %s4600_s14 = inlined_call_operand.vmem [shape: f32[2,1,32], index: 14, kind: input, shape index: {}]   ;;  %s4601_s15 = inlined_call_operand.vmem [shape: f32[32,32], index: 15, kind: input, shape index: {}]   ;;  %s4602_s16 = inlined_call_operand.vmem [shape: f32[1,32], index: 16, kind: input, shape index: {}]   ;;  %s4603_s17 = inlined_call_operand.hbm [shape: f32[2,16,32], index: 17, kind: output, shape index: {0}]   ;;  %s4604_s18 = inlined_call_operand.hbm [shape: f32[2,1,32], index: 18, kind: output, shape index: {1}]  }
   0x1   :  { %4628 = sst [smem:[#allocation22_spill]] %s4586_s0 }
   0x2   :  { %4629 = sst [smem:[#allocation23_spill]] %s4587_s1 }
   0x3   :  { %4630 = sst [smem:[#allocation24_spill]] %s4588_s2 }
   0x4   :  { %4631 = sst [smem:[#allocation25_spill]] %s4589_s3 }
   0x5   :  { %4632 = sst [smem:[#allocation26_spill]] %s4590_s4 }
   0x6   :  { %4633 = sst [smem:[#allocation27_spill]] %s4591_s5 }
   0x7   :  { %4634 = sst [smem:[#allocation28_spill]] %s4592_s6 }
   0x8   :  { %4635 = sst [smem:[#allocation29_spill]] %s4593_s7 }
   0x9   :  { %4636 = sst [smem:[#allocation30_spill]] %s4594_s8 }
   0xa   :  { %4637 = sst [smem:[#allocation31_spill]] %s4595_s9 }
   0xb   :  { %4638 = sst [smem:[#allocation32_spill]] %s4596_s10 }
   0xc   :  { %4639 = sst [smem:[#allocation33_spill]] %s4597_s11 }
   0xd   :  { %4640 = sst [smem:[#allocation34_spill]] %s4598_s12 }
   0xe   :  { %4641 = sst [smem:[#allocation35_spill]] %s4599_s13 }
   0xf   :  { %4642 = sst [smem:[#allocation36_spill]] %s4600_s14 }
  0x10   :  { %4643 = sst [smem:[#allocation37_spill]] %s4601_s15 }
  0x11   :  { %4644 = sst [smem:[#allocation38_spill]] %s4602_s16 }
  0x12   :  { %4645 = sst [smem:[#allocation39_spill]] %s4603_s17 }
  0x13   :  { %4646 = sst [smem:[#allocation40_spill]] %s4604_s18 }
  0x14   :  { %24 = vsyncpa [#allocation3], 0 }
  0x15   :  { %26 = vsyncpa [#allocation3 + $0x1], 0 }
  0x16   :  { %27 = vsyncpa [#allocation6], 0 }
  0x17   :  { %28 = vsyncpa [#allocation9], 0 }
  0x18   :  { %29 = vsyncpa [#allocation12], 0 }
  0x19   :  { %30 = vsyncpa [#allocation4], 0 }
  0x1a   :  { %32 = vsyncpa [#allocation4 + $0x1], 0 }
  0x1b   :  { %33 = vsyncpa [#allocation15], 0 }
  0x1c   :  { %35 = vsyncpa [#allocation15 + $0x1], 0  ;;  %s3920_s27 = smov 0   ;;  %s3922_s28 = smov 0  }
  0x1d   :  { %s3924_s29 = smov 0   ;;  %s3926_s30 = smov 0  }
  0x1e LB: > { %s3801_s0 = smov [#allocation5]   ;;  %s3941_s1 = sadd.s32 4294967295, %s3799_s30   ;;  %s3799_s30 = sphi %s3926_s30, %s4695_s30   ;;  %s3795_s29 = sphi %s3924_s29, %s4694_s29   ;;  %s3791_s28 = sphi %s3922_s28, %s4693_s28   ;;  %s3787_s27 = sphi %s3920_s27, %s4692_s27  }
  0x1f   : > { %s473_s19 = sshll.u32 %s3801_s0, 4  ;;  %p2799_p0 = scmp.ge.s32.totalorder %s3799_s30, 1  ;;  %s3946_s19 = int_to_ptr.vmem [resolvable:$true] %s473_s19 }
  0x20   : > { %p4619_p1 = scmp.eq.s32.totalorder %s3941_s1, 0  ;;  %p460_p2 = scmp.lt.s32.totalorder %s3799_s30, 3 }
  0x21   : > { %s3802_s21 = smov [#allocation8]   ;;  %s3803_s23 = smov [#allocation7]  }
  0x22   : > { %p3948_p3 = pnand %p2799_p0, %p460_p2  ;;  %s503_s22 = sshll.u32 %s3802_s21, 4  ;;  %s3955_s22 = int_to_ptr.vmem [resolvable:$true] %s503_s22 }
  0x23   : > { %s484_s24 = sshll.u32 %s3803_s23, 4  ;;  %s4649_s0 = sld [smem:[#allocation23_spill]]  ;;  %s3963_s24 = int_to_ptr.vmem [resolvable:$true] %s484_s24 }
  0x24   : > { %s4647_s20 = scalar_select %p3948_p3, 1, 0 }
  0x25   : > { %p3325_p5 = pneg %p3948_p3 }
  0x27   : > { %p3959_p6 = pnand %p3325_p5, %p4619_p1 }
  0x29   : > { %s3519_s18 = scalar_lea.hbm %s4649_s0, 16  ;;  %p3973_p8 = pneg %p3959_p6 }
  0x2a   : > { %p3520_p7 = scmp.ne.s32.totalorder %s4649_s0, %s3519_s18  ;;  %p3526_p11 = scmp.lt.u32.totalorder %s3519_s18, %s4649_s0 }
  0x2c   : > { %p3522_p9 = pnand %p3973_p8, %p3520_p7 }
  0x2e   : > { %p3523_p10 = pneg %p3522_p9 }
  0x30   : > { %p3528_p12 = pnand %p3526_p11, %p3523_p10 }
  0x32   : > { %3531 = shalt.err (!%p3528_p12)
}
  0x33   : > { %s3532_s16 = scalar_lea.vmem %s3946_s19, 16  ;;  %s3539_s17 = scalar_lea.vmem %s3946_s19, 32 }
  0x34   : > { %p3533_p13 = scmp.ne.s32.totalorder %s3946_s19, %s3532_s16  ;;  %p3540_p5 = scmp.lt.s32.totalorder %s3946_s19, %s3946_s19 }
  0x35   : > { %p3541_p7 = scmp.lt.s32.totalorder %s3539_s17, %s3532_s16 }
  0x36   : > { %p3535_p0 = pnand %p3533_p13, %p3973_p8 }
  0x37   : > { %p3542_p9 = por %p3541_p7, %p3540_p5 }
  0x38   : > { %p3536_p2 = pneg %p3535_p0 }
  0x3a   : > { %p3543_p4 = pnand %p3542_p9, %p3536_p2 }
  0x3c   : > { %3546 = shalt.err (!%p3543_p4)
}
  0x3d   : > { %3328 = dma.hbm_to_vmem [thread:$0]  (!%p3959_p6), %s4649_s0, 16, %s3946_s19, [#allocation6]  }
  0x3e   : > { %s4651_s6 = sld [smem:[#allocation28_spill]] }
  0x44   : > { %s3547_s23 = scalar_lea.hbm %s4651_s6, 32 }
  0x45   : > { %p3548_p10 = scmp.ne.s32.totalorder %s4651_s6, %s3547_s23  ;;  %p3554_p4 = scmp.lt.u32.totalorder %s3547_s23, %s4651_s6 }
  0x47   : > { %p3550_p11 = pnand %p3548_p10, %p3973_p8 }
  0x49   : > { %p3551_p12 = pneg %p3550_p11 }
  0x4b   : > { %p3556_p13 = pnand %p3554_p4, %p3551_p12 }
  0x4d   : > { %3559 = shalt.err (!%p3556_p13)
}
  0x4e   : > { %s3560_s19 = scalar_lea.vmem %s3955_s22, 32  ;;  %p3568_p7 = scmp.lt.s32.totalorder %s3955_s22, %s3955_s22 }
  0x4f   : > { %p3561_p0 = scmp.ne.s32.totalorder %s3955_s22, %s3560_s19  ;;  %p3569_p9 = scmp.lt.s32.totalorder %s3560_s19, %s3560_s19 }
  0x51   : > { %p3563_p2 = pnand %p3561_p0, %p3973_p8  ;;  %p3570_p10 = por %p3569_p9, %p3568_p7 }
  0x53   : > { %p3564_p5 = pneg %p3563_p2 }
  0x55   : > { %p3571_p11 = pnand %p3570_p10, %p3564_p5 }
  0x57   : > { %3574 = shalt.err (!%p3571_p11)
}
  0x58   : > { %s4615_s13 = smov 16   ;;  %s4617_s14 = smov 1  }
  0x59   : > { %3334 = dma.hbm_to_vmem [thread:$0]  (!%p3959_p6), %s4651_s6, 32, %s3955_s22, [#allocation9], %s4615_s13, %s4615_s13, %s4617_s14  }
  0x5a   : > { %s4652_s23 = sld [smem:[#allocation24_spill]] }
  0x60   : > { %s3575_s16 = scalar_lea.hbm %s4652_s23, 16 }
  0x61   : > { %p3576_p12 = scmp.ne.s32.totalorder %s4652_s23, %s3575_s16  ;;  %p3582_p0 = scmp.lt.u32.totalorder %s3575_s16, %s4652_s23 }
  0x63   : > { %p3578_p4 = pnand %p3576_p12, %p3973_p8 }
  0x65   : > { %p3579_p13 = pneg %p3578_p4 }
  0x67   : > { %p3584_p2 = pnand %p3582_p0, %p3579_p13 }
  0x69   : > { %3587 = shalt.err (!%p3584_p2)
}
  0x6a   : > { %s3588_s22 = scalar_lea.vmem %s3963_s24, 16  ;;  %s3595_s15 = scalar_lea.vmem %s3963_s24, 32 }
  0x6b   : > { %p3589_p5 = scmp.ne.s32.totalorder %s3963_s24, %s3588_s22  ;;  %p3596_p10 = scmp.lt.s32.totalorder %s3963_s24, %s3963_s24 }
  0x6c   : > { %p3597_p11 = scmp.lt.s32.totalorder %s3595_s15, %s3588_s22 }
  0x6d   : > { %p3591_p7 = pnand %p3589_p5, %p3973_p8 }
  0x6e   : > { %p3598_p12 = por %p3597_p11, %p3596_p10 }
  0x6f   : > { %p3592_p9 = pneg %p3591_p7 }
  0x71   : > { %p3599_p4 = pnand %p3598_p12, %p3592_p9 }
  0x73   : > { %3602 = shalt.err (!%p3599_p4)
}
  0x74   : > { %3331 = dma.hbm_to_vmem [thread:$0]  (!%p3959_p6), %s4652_s23, 16, %s3963_s24, [#allocation6]  }
  0x75   : > { %s3806_s18 = smov [#allocation10]   ;;  %s3807_s26 = smov [#allocation11]  }
  0x76   : > { %s516_s25 = sshll.u32 %s3806_s18, 4  ;;  %s529_s16 = sshll.u32 %s3807_s26, 4  ;;  %s517_s25 = int_to_ptr.vmem [resolvable:$true] %s516_s25  ;;  %s530_s16 = int_to_ptr.vmem [resolvable:$true] %s529_s16 }
  0x77   : > { %s4653_s7 = sld [smem:[#allocation29_spill]] }
  0x7d   : > { %s3603_s22 = scalar_lea.hbm %s4653_s7, 32 }
  0x7e   : > { %p3604_p13 = scmp.ne.s32.totalorder %s4653_s7, %s3603_s22  ;;  %p3610_p5 = scmp.lt.u32.totalorder %s3603_s22, %s4653_s7 }
  0x80   : > { %p3606_p0 = pnand %p3604_p13, %p3973_p8 }
  0x82   : > { %p3607_p2 = pneg %p3606_p0 }
  0x84   : > { %p3612_p7 = pnand %p3610_p5, %p3607_p2 }
  0x86   : > { %3615 = shalt.err (!%p3612_p7)
}
  0x87   : > { %s3616_s24 = scalar_lea.vmem %s517_s25, 32  ;;  %p3624_p12 = scmp.lt.s32.totalorder %s517_s25, %s517_s25 }
  0x88   : > { %p3617_p9 = scmp.ne.s32.totalorder %s517_s25, %s3616_s24  ;;  %p3625_p4 = scmp.lt.s32.totalorder %s3616_s24, %s3616_s24 }
  0x8a   : > { %p3619_p10 = pnand %p3617_p9, %p3973_p8  ;;  %p3626_p1 = por %p3625_p4, %p3624_p12 }
  0x8c   : > { %p3620_p11 = pneg %p3619_p10 }
  0x8e   : > { %p3627_p3 = pnand %p3626_p1, %p3620_p11 }
  0x90   : > { %3630 = shalt.err (!%p3627_p3)
}
  0x91   : > { %s4654_s13 = smov 1   ;;  %s4655_s0 = smov 16  }
  0x92   : > { %3337 = dma.hbm_to_vmem [thread:$0]  (!%p3959_p6), %s4653_s7, 32, %s517_s25, [#allocation9], %s4655_s0, %s4655_s0, %s4654_s13  }
  0x93   : > { %s4656_s8 = sld [smem:[#allocation30_spill]] }
  0x99   : > { %s3631_s19 = scalar_lea.hbm %s4656_s8, 32 }
  0x9a   : > { %p3632_p1 = scmp.ne.s32.totalorder %s4656_s8, %s3631_s19  ;;  %p3638_p0 = scmp.lt.u32.totalorder %s3631_s19, %s4656_s8 }
  0x9c   : > { %p3634_p3 = pnand %p3632_p1, %p3973_p8 }
  0x9e   : > { %p3635_p13 = pneg %p3634_p3 }
  0xa0   : > { %p3640_p2 = pnand %p3638_p0, %p3635_p13 }
  0xa2   : > { %3643 = shalt.err (!%p3640_p2)
}
  0xa3   : > { %s3644_s14 = scalar_lea.vmem %s530_s16, 32  ;;  %p3652_p10 = scmp.lt.s32.totalorder %s530_s16, %s530_s16 }
  0xa4   : > { %p3645_p5 = scmp.ne.s32.totalorder %s530_s16, %s3644_s14  ;;  %p3653_p11 = scmp.lt.s32.totalorder %s3644_s14, %s3644_s14 }
  0xa6   : > { %p3647_p7 = pnand %p3645_p5, %p3973_p8  ;;  %p3654_p12 = por %p3653_p11, %p3652_p10 }
  0xa8   : > { %p3648_p9 = pneg %p3647_p7 }
  0xaa   : > { %p3655_p4 = pnand %p3654_p12, %p3648_p9 }
  0xac   : > { %3658 = shalt.err (!%p3655_p4)
}
  0xad   : > { %3340 = dma.hbm_to_vmem [thread:$0]  (!%p3959_p6), %s4656_s8, 32, %s530_s16, [#allocation12], %s4655_s0, %s4655_s0, %s4654_s13  }
  0xae   : > { %s2798_s2 = sadd.s32 4294967294, %s3799_s30   ;;  %s4089_s21 = sadd.s32 1, %s3799_s30  }
  0xaf   : > { %s48_s26 = sadd.s32 1, %s3795_s29  ;;  %s45_s17 = ssub.s32 %s3799_s30, %s4089_s21 }
  0xb0   : > { %p55_p8 = scmp.ne.s32.totalorder %s3795_s29, %s3791_s28  ;;  %p46_p1 = scmp.eq.s32.totalorder %s45_s17, 0 }
  0xb1   : > { %p56_p3 = scmp.eq.s32.totalorder %s3799_s30, 0  ;;  %p61_p13 = scmp.ne.s32.totalorder %s3791_s28, %s3787_s27 }
  0xb2   : > { %p421_p0 = scmp.eq.s32.totalorder %s3941_s1, 1  ;;  %p4657_p5 = scmp.eq.s32.totalorder %s3941_s1, 0 }
  0xb3   : > { %s4101_s19 = scalar_select %p46_p1, %s3795_s29, %s48_s26  }
  0xb4   : > { %p57_p2 = por %p56_p3, %p55_p8  ;;  %p4105_p7 = por %p4657_p5, %p61_p13 }
  0xb5   : > { %p4109_p6 = por %p421_p0, %p55_p8  ;;  %p427_p9 = scmp.eq.s32.totalorder %s2798_s2, 1 }
  0xb6   : > { %p3357_p10 = scmp.lt.s32.totalorder %s3799_s30, 2  ;;  %s567_s13 = sand.u32 1, %s3795_s29  }
  0xb7   : > { %s4659_s16 = scalar_select %p4109_p6, 1, 0 }
  0xb8   : > { %p4115_p11 = por %p427_p9, %p61_p13  ;;  %s2806_s15 = sshll.u32 %s567_s13, 4 }
  0xb9   : > { %s2907_s12 = sshll.u32 %s3799_s30, 8  ;;  %s4661_s25 = sld [smem:[#allocation22_spill]] }
  0xba   : > { %s4660_s0 = scalar_select %p4115_p11, 1, 0 }
  0xbb   : > { %s571_s26 = scalar_lea.vmem [#allocation2], %s2806_s15  ;;  %p4125_p12 = pnand %p3357_p10, %p57_p2 }
  0xbc   : > { %s578_s17 = sshll.u32 %s571_s26, 4  ;;  %s4131_s6 = scalar_lea.sflag [#allocation3], %s567_s13  ;;  %s4129_s17 = int_to_ptr.vmem [resolvable:$true] %s578_s17 }
  0xbd   : > { %p3661_p8 = pneg %p4125_p12 }
  0xbf   : > { %s4123_s18 = scalar_lea.hbm %s4661_s25, %s2907_s12  ;;  %s3664_s24 = scalar_lea.hbm %s4661_s25, 512 }
  0xc0   : > { %s3659_s7 = scalar_lea.hbm %s4123_s18, 256  ;;  %p3665_p13 = scmp.lt.u32.totalorder %s4123_s18, %s4661_s25 }
  0xc1   : > { %p3660_p4 = scmp.ne.s32.totalorder %s4123_s18, %s3659_s7  ;;  %p3666_p0 = scmp.lt.u32.totalorder %s3664_s24, %s3659_s7 }
  0xc2   : > { %p3668_p5 = scmp.lt.u32.totalorder %s3659_s7, %s4123_s18 }
  0xc3   : > { %p3662_p1 = pnand %p3661_p8, %p3660_p4  ;;  %p3667_p2 = por %p3666_p0, %p3665_p13 }
  0xc5   : > { %p3663_p3 = pneg %p3662_p1  ;;  %p3669_p9 = por %p3668_p5, %p3667_p2 }
  0xc7   : > { %p3670_p10 = pnand %p3669_p9, %p3663_p3 }
  0xc9   : > { %3673 = shalt.err (!%p3670_p10)
}
  0xca   : > { %s3674_s13 = scalar_lea.vmem %s4129_s17, 256  ;;  %s3808_s15 = smov [#allocation2]  }
  0xcb   : > { %p3675_p4 = scmp.ne.s32.totalorder %s4129_s17, %s3674_s13  ;;  %s3679_s12 = sshll.u32 %s3808_s15, 4  ;;  %s3680_s12 = int_to_ptr.vmem [resolvable:$false] %s3679_s12 }
  0xcc   : > { %s3681_s14 = scalar_lea.vmem %s3680_s12, 512  ;;  %p3682_p6 = scmp.lt.s32.totalorder %s4129_s17, %s3680_s12 }
  0xcd   : > { %p3677_p1 = pnand %p3675_p4, %p3661_p8  ;;  %p3683_p13 = scmp.lt.s32.totalorder %s3681_s14, %s3674_s13 }
  0xcf   : > { %p3678_p11 = pneg %p3677_p1  ;;  %p3684_p0 = por %p3683_p13, %p3682_p6 }
  0xd1   : > { %p3685_p2 = pnand %p3684_p0, %p3678_p11 }
  0xd3   : > { %3688 = shalt.err (!%p3685_p2)
}
  0xd4   : > { %s3809_s7 = smov 128   ;;  %s3810_s24 = smov 8  }
  0xd5   : > { %3344 = dma.hbm_to_vmem [thread:$0]  (!%p4125_p12), %s4123_s18, 256, %s4129_s17, %s4131_s6, %s3809_s7, %s3809_s7, %s3810_s24  }
  0xd6   : > { %p4663_p8 = scmp.ne.s32.totalorder %s4647_s20, 0 }
  0xd7   : > { %s4162_s26 = sand.u32 (!%p4663_p8), 1, %s3791_s28  }
  0xd8   : > { %590 = sbr.rel (%p4663_p8) target bundleno = 6383 (0x18ef), region = 88  ;;  %s4622_s13 = sshll.u32 (!%p4663_p8), %s4162_s26, 4 }
  0xd9   : > { %s593_s15 = scalar_lea.sflag (!%p4663_p8), [#allocation3], %s4162_s26  ;;  %s596_s12 = scalar_lea.vmem (!%p4663_p8), [#allocation2], %s4622_s13 }
  0xdf   : > { %3762 = dma.done.wait (%p4105_p7), %s593_s15, 256  }
  0xe0   : > { %3764 = vsyncadd (%p4105_p7), %s593_s15, 4294967040  ;;  %p4664_p6 = scmp.eq.s32.totalorder %s3941_s1, 0 }
  0xe2   : > { %3766 = dma.done.wait (%p4664_p6), [#allocation6], 32   ;;  %p4665_p11 = pmov %p4664_p6 }
  0xe3   : > { %p4666_p12 = pmov %p4664_p6 }
  0xe4   : > { %3768 = vsyncadd (%p4665_p11), [#allocation6], 4294967264 }
  0xe5   : > { %3770 = dma.done.wait (%p4666_p12), [#allocation9], 64   ;;  %p4667_p3 = pmov %p4664_p6 }
  0xe7   : > { %3772 = vsyncadd (%p4667_p3), [#allocation9], 4294967232  ;;  %p4668_p5 = pmov %p4667_p3 }
  0xe8   : > { %p4669_p9 = pmov %p4667_p3 }
  0xe9   : > { %3774 = dma.done.wait (%p4668_p5), [#allocation12], 32  }
  0xea   : > { %3776 = vsyncadd (%p4669_p9), [#allocation12], 4294967264  ;;  %vm677_vm0 = vcmask 261120   ;;  %v673_v0 = vld [vmem:[%s596_s12] sm:$0xff]  ;;  %v674_v1 = vld [vmem:[%s596_s12 + $0x8] sm:$0xff]  ;;  %s4670_s3 = sld [smem:[#allocation25_spill]]  ;;  %v721_v47 = vlaneseq }
  0xeb   : > { %v678_v2 = vsel %vm677_vm0, %v673_v0, 0.0  ;;  %v681_v3 = vsel %vm677_vm0, %v674_v1, 0.0  ;;  %v2817_v27 = vld [vmem:[#allocation5] ss:$0 sm:$0xff]  ;;  %v2818_v29 = vld [vmem:[#allocation7] ss:$0 sm:$0xff] }
  0xec   : > { %679 = vadd.xlane.f32.xlu0 %v678_v2  ;;  %s4671_s4 = sld [smem:[#allocation26_spill]]  ;;  %vm823_vm1 = vcmask 130048   ;;  %s3811_s12 = smov 96   ;;  %v722_v48 = vand.u32 127, %v721_v47  ;;  %v3814_v51 = vmov -1e+09  }
  0xed   : > { %s3812_s6 = smov 80   ;;  %s3813_s20 = smov 112   ;;  %vm4222_vm2 = vmpackc.low %vm823_vm1, %vm823_vm1  ;;  %vm1497_vm4 = vcmask 523264   ;;  %vm3819_vm5 = vmmov 0  }
  0xee   : > { %vm723_vm3 = vcmp.lt.s32.totalorder %v722_v48, 12  ;;  %s4623_s22 = smov 64   ;;  %s4626_s18 = smov 48  }
  0xef   : > { %v4231_v52 = vsel %vm723_vm3, 0.0, %v3814_v51  ;;  %s4674_s5 = sld [smem:[#allocation27_spill]]  ;;  %s4624_s17 = smov 16  }
  0xf0   : > { %682 = vadd.xlane.f32.xlu0 %v681_v3  ;;  %v725_v14 = vld [vmem:[%s4670_s3] sm:$0xff]  ;;  %v726_v15 = vld [vmem:[%s4670_s3 + $0x8] sm:$0xff]  ;;  %v727_v16 = vld [vmem:[%s4670_s3 + $0x10] sm:$0xff]  ;;  %s4675_s9 = sld [smem:[#allocation31_spill]]  ;;  %s4676_s11 = sld [smem:[#allocation33_spill]] }
  0xf1   : > { %v3173_v17 = vpack.c.bf16 %v726_v15, %v725_v14  ;;  %v728_v18 = vld [vmem:[%s4670_s3 + $0x18] sm:$0xff]  ;;  %s4677_s10 = sld [smem:[#allocation32_spill]]  ;;  %s4678_s14 = sld [smem:[#allocation34_spill]] }
  0xf2   : > { %v3177_v19 = vpack.c.bf16 %v728_v18, %v727_v16  ;;  %v2819_v36 = vld [vmem:[%s4671_s4] ss:$0 sm:$0xff]  ;;  %s4679_s15 = sld [smem:[#allocation35_spill]]  ;;  %s4680_s13 = sld [smem:[#allocation36_spill]] }
  0xf3   : > { %3174 = vmatprep.subr.bf16.mxu0 %v3173_v17  ;;  %s4685_s2 = sshll.u32 %s4162_s26, 4  ;;  %s4686_s24 = sld [smem:[#allocation39_spill]] }
  0xf4   : > { %3176 = vmatpush3.bf16.msra.mxu0 %v3173_v17  ;;  %p4687_p10 = scmp.ne.s32.totalorder %s4659_s16, 0 }
  0xf5   : > { %3178 = vmatprep.subr.bf16.mxu0 %v3177_v19 }
  0xf8   : > { %3180 = vmatpush3.bf16.msra.mxu0 %v3177_v19 }
 0x179   : > { %v680_v4 = vpop.xlane.xlu0 %679 }
 0x17a   : > { %v685_v5 = vmul.f32 0.03125, %v680_v4 }
 0x17c   : > { %v687_v6 = vsub.f32 %v673_v0, %v685_v5 }
 0x17d   : > { %v683_v7 = vpop.xlane.xlu0 %682 }
 0x17e   : > { %v686_v8 = vmul.f32 0.03125, %v683_v7  ;;  %v689_v9 = vmul.f32 %v687_v6, %v687_v6 }
 0x180   : > { %v688_v10 = vsub.f32 %v674_v1, %v686_v8  ;;  %v691_v11 = vsel %vm677_vm0, %v689_v9, 0.0 }
 0x181   : > { %692 = vadd.xlane.f32.xlu1 %v691_v11 }
 0x182   : > { %v690_v12 = vmul.f32 %v688_v10, %v688_v10 }
 0x184   : > { %v694_v13 = vsel %vm677_vm0, %v690_v12, 0.0 }
 0x185   : > { %695 = vadd.xlane.f32.xlu1 %v694_v13 }
 0x20e   : > { %v693_v20 = vpop.xlane.xlu1 %692 }
 0x20f   : > { %v697_v21 = vmul.f32 0.03125, %v693_v20 }
 0x211   : > { %v699_v22 = vadd.f32 1e-12, %v697_v21 }
 0x212   : > { %v696_v23 = vpop.xlane.xlu1 %695 }
 0x213   : > { %3457 = vrsqrt.f32 %v699_v22  ;;  %v698_v24 = vmul.f32 0.03125, %v696_v23 }
 0x215   : > { %v700_v25 = vadd.f32 1e-12, %v698_v24 }
 0x217   : > { %3459 = vrsqrt.f32 %v700_v25 }
 0x21d   : > { %v3458_v26 = vpop.eup %3457 }
 0x21e   : > { %v703_v28 = vmul.f32 %v3458_v26, %v687_v6 }
 0x220   : > { %v711_v30 = vmul.f32 %v2817_v27, %v703_v28 }
 0x221   : > { %v3460_v31 = vpop.eup %3459 }
 0x222   : > { %v704_v32 = vmul.f32 %v3460_v31, %v688_v10  ;;  %v4200_v33 = vadd.f32 %v2818_v29, %v711_v30 }
 0x224   : > { %v712_v34 = vmul.f32 %v2817_v27, %v704_v32  ;;  %3010 = vmatprep.mubr.msk.f32.mxu0 %vm677_vm0, %v4200_v33 }
 0x226   : > { %v4204_v35 = vadd.f32 %v2818_v29, %v712_v34 }
 0x228   : > { %3011 = vmatmul.mubr.msk.f32.vlgmr.msra.gmra.mrb[0].mxu0 %vm677_vm0, %v4204_v35 }
 0x2fb   : > { %v3012_v37 = vpop.f32.mrb[0].mxu0 }
 0x2fc   : > { %v814_v38 = vadd.f32 %v3012_v37, %v2819_v36  ;;  %v808_v39 = vpop.f32.mrb[1].mxu0 }
 0x2fd   : > { %v809_v40 = vadd.f32 %v2819_v36, %v808_v39 }
 0x2ff   : > { %3017 = vmatprep.mubr.msk.f32.mxu1 %vm823_vm1, %v809_v40  ;;  %v4212_v41 = vpack.i.bf16 %v814_v38, %v809_v40 }
 0x301   : > { %3418 = vrot.lane.b32.xlu0 %v4212_v41, %s3811_s12 }
 0x305   : > { %3428 = vrot.lane.b32.xlu0 %v4212_v41, %s3812_s6 }
 0x309   : > { %1020 = vrot.lane.b32.xlu0 %v809_v40, %s3813_s20 }
 0x30d   : > { %1022 = vrot.lane.b32.xlu0 %v814_v38, %s3813_s20 }
 0x373   : > { %v3419_v42 = vpop.permute.xlu0 %3418 }
 0x374   : > { %v3421_v43 = vunpack.i.h.bf16 %v3419_v42  ;;  %v3420_v44 = vunpack.i.l.bf16 %v3419_v42 }
 0x376   : > { %v3181_v46 = vpack.c.bf16 %v3421_v43, %v3420_v44 }
 0x377   : > { %v3429_v7 = vpop.permute.xlu0 %3428 }
 0x378   : > { %3183 = vmatprep.subr.msk.bf16.mxu1 %vm4222_vm2, %v3181_v46  ;;  %v3431_v9 = vunpack.i.h.bf16 %v3429_v7  ;;  %v3430_v10 = vunpack.i.l.bf16 %v3429_v7 }
 0x379   : > { %3186 = vmatpush3.bf16.xpose.msk.msra.mxu1 %vm4222_vm2, %v3181_v46 }
 0x37a   : > { %v3191_v14 = vpack.c.bf16 %v3431_v9, %v3430_v10 }
 0x37b   : > { %v1021_v19 = vpop.permute.xlu0 %1020 }
 0x37f   : > { %v1023_v20 = vpop.permute.xlu0 %1022 }
 0x380   : > { %3018 = vmatmul.mubr.msk.f32.vlgmr.msra.gmra.mrb[0].mxu1 %vm823_vm1, %v814_v38 }
 0x453   : > { %v3019_v49 = vpop.f32.mrb[0].mxu1 }
 0x454   : > { %v898_v50 = vpop.f32.mrb[1].mxu1  ;;  %v908_v53 = vmul.f32 0.25, %v3019_v49 }
 0x455   : > { %v907_v54 = vmul.f32 0.25, %v898_v50 }
 0x456   : > { %v910_v57 = vadd.f32 %v908_v53, %v4231_v52 }
 0x457   : > { %v909_v55 = vadd.f32 %v907_v54, %v4231_v52 }
 0x458   : > { %v914_v58 = vsel %vm823_vm1, %v910_v57, -inf }
 0x459   : > { %v911_v56 = vsel %vm823_vm1, %v909_v55, -inf }
 0x45a   : > { %912 = vmax.xlane.f32.xlu1 %v911_v56  ;;  %v1235_v56 = vld [vmem:[%s4674_s5 + $0x8] sm:$0xff] }
 0x45e   : > { %915 = vmax.xlane.f32.xlu1 %v914_v58 }
 0x4e7   : > { %v913_v59 = vpop.xlane.xlu1 %912 }
 0x4e8   : > { %v917_v60 = vsub.f32 %v909_v55, %v913_v59  ;;  %v1234_v55 = vld [vmem:[%s4674_s5] sm:$0xff]  ;;  %v1237_v59 = vld [vmem:[%s4674_s5 + $0x18] sm:$0xff] }
 0x4e9   : > { %v3201_v58 = vpack.c.bf16 %v1235_v56, %v1234_v55  ;;  %v1488_v55 = vld [vmem:[%s4676_s11 + $0x30] sm:$0xff]  ;;  %v1489_v56 = vld [vmem:[%s4676_s11 + $0x38] sm:$0xff] }
 0x4ea   : > { %v919_v63 = vmul.f32 1.442695, %v917_v60 }
 0x4eb   : > { %v916_v61 = vpop.xlane.xlu1 %915 }
 0x4ec   : > { %v918_v62 = vsub.f32 %v910_v57, %v916_v61  ;;  %v1236_v57 = vld [vmem:[%s4674_s5 + $0x10] sm:$0xff] }
 0x4ed   : > { %v3205_v60 = vpack.c.bf16 %v1237_v59, %v1236_v57  ;;  %v3229_v57 = vpack.c.bf16 %v1489_v56, %v1488_v55  ;;  %v2846_v55 = vld [vmem:[%s4680_s13] ss:$0 sm:$0xff] }
 0x4ee   : > { %v921_v0 = vmul.f32 1.442695, %v918_v62 }
 0x4f0   : > { %3461 = vpow2.f32 %v921_v0 }
 0x4f1   : > { %3463 = vpow2.f32 %v919_v63 }
 0x4fa   : > { %v3462_v1 = vpop.eup %3461 }
 0x4fb   : > { %v926_v2 = vsel %vm823_vm1, %v3462_v1, 0.0  ;;  %v3464_v3 = vpop.eup %3463 }
 0x4fc   : > { %927 = vadd.xlane.f32.xlu1 %v926_v2  ;;  %v923_v4 = vsel %vm823_vm1, %v3464_v3, 0.0 }
 0x500   : > { %924 = vadd.xlane.f32.xlu1 %v923_v4 }
 0x511   : > { %3423 = vrot.lane.b32.xlu1 %v4212_v41, %s4623_s22 }
 0x589   : > { %v928_v5 = vpop.xlane.xlu1 %927 }
 0x58a   : > { %3465 = vrcp.f32 %v928_v5 }
 0x58d   : > { %v925_v6 = vpop.xlane.xlu1 %924 }
 0x58e   : > { %3467 = vrcp.f32 %v925_v6 }
 0x591   : > { %v3424_v8 = vpop.permute.xlu1 %3423 }
 0x592   : > { %v3426_v11 = vunpack.i.h.bf16 %v3424_v8  ;;  %v3425_v12 = vunpack.i.l.bf16 %v3424_v8 }
 0x594   : > { %v3187_v13 = vpack.c.bf16 %v3426_v11, %v3425_v12  ;;  %v3466_v15 = vpop.eup %3465 }
 0x595   : > { %v932_v18 = vmul.f32 %v3466_v15, %v3462_v1 }
 0x596   : > { %3188 = vmatprep.subr.bf16.mxu1 %v3187_v13 }
 0x597   : > { %3190 = vmatpush3.bf16.msra.mxu1 %v3187_v13 }
 0x598   : > { %v3468_v16 = vpop.eup %3467  ;;  %3193 = vmatprep.subr.msk.bf16.mxu1 %vm4222_vm2, %v3191_v14 }
 0x599   : > { %v931_v17 = vmul.f32 %v3468_v16, %v3464_v3  ;;  %v2834_v3 = vld [vmem:[#allocation8] ss:$0 sm:$0xff] }
 0x59b   : > { %3024 = vmatprep.mubr.msk.f32.mxu1 %vm823_vm1, %v931_v17 }
 0x59c   : > { %3025 = vmatmul.mubr.msk.f32.vlgmr.msra.gmra.mrb[2].mxu1 %vm823_vm1, %v932_v18 }
 0x59d   : > { %3031 = vmatprep.mubr.msk.f32.mxu1 %vm823_vm1, %v1021_v19 }
 0x5a0   : > { %3196 = vmatpush3.bf16.xpose.msk.msra.mxu1 %vm4222_vm2, %v3191_v14 }
 0x5a7   : > { %3032 = vmatmul.mubr.msk.f32.vlgmr.msra.gmra.mrb[4].mxu1 %vm823_vm1, %v1023_v20 }
 0x66f   : > { %v4249_v21 = vpop.f32.mrb[2].mxu1 }
 0x670   : > { %v1011_v22 = vpop.f32.mrb[3].mxu1 }
 0x67a   : > { %v3033_v23 = vpop.f32.mrb[4].mxu1 }
 0x67b   : > { %v1112_v24 = vmul.f32 0.25, %v3033_v23  ;;  %v1102_v25 = vpop.f32.mrb[5].mxu1  ;;  %v1374_v23 = vld [vmem:[%s4675_s9 + $0x10] sm:$0xff] }
 0x67c   : > { %v1111_v26 = vmul.f32 0.25, %v1102_v25 }
 0x67d   : > { %v1114_v27 = vadd.f32 %v1112_v24, %v4231_v52  ;;  %v1375_v24 = vld [vmem:[%s4675_s9 + $0x18] sm:$0xff] }
 0x67e   : > { %v1113_v28 = vadd.f32 %v1111_v26, %v4231_v52  ;;  %v3213_v25 = vpack.c.bf16 %v1375_v24, %v1374_v23 }
 0x67f   : > { %v1118_v29 = vsel %vm823_vm1, %v1114_v27, -inf }
 0x680   : > { %1119 = vmax.xlane.f32.xlu0 %v1118_v29  ;;  %v1115_v30 = vsel %vm823_vm1, %v1113_v28, -inf }
 0x681   : > { %1116 = vmax.xlane.f32.xlu1 %v1115_v30 }
 0x692   : > { %3433 = vrot.lane.b32.xlu1 %v4212_v41, %s4626_s18  ;;  %s4684_s18 = sld [smem:[#allocation37_spill]] }
 0x70d   : > { %v1120_v31 = vpop.xlane.xlu0 %1119 }
 0x70e   : > { %v1122_v32 = vsub.f32 %v1114_v27, %v1120_v31  ;;  %v1117_v34 = vpop.xlane.xlu1 %1116 }
 0x70f   : > { %v1121_v36 = vsub.f32 %v1113_v28, %v1117_v34  ;;  %v2837_v34 = vld [vmem:[#allocation10] ss:$0 sm:$0xff] }
 0x710   : > { %v1125_v37 = vmul.f32 1.442695, %v1122_v32 }
 0x711   : > { %v1123_v38 = vmul.f32 1.442695, %v1121_v36 }
 0x712   : > { %v3434_v39 = vpop.permute.xlu1 %3433 }
 0x713   : > { %3469 = vpow2.f32 %v1123_v38  ;;  %v3436_v40 = vunpack.i.h.bf16 %v3434_v39  ;;  %v3435_v42 = vunpack.i.l.bf16 %v3434_v39  ;;  %v2838_v39 = vld [vmem:[#allocation11] ss:$0 sm:$0xff] }
 0x714   : > { %3471 = vpow2.f32 %v1125_v37 }
 0x715   : > { %v3197_v43 = vpack.c.bf16 %v3436_v40, %v3435_v42 }
 0x717   : > { %3198 = vmatprep.subr.bf16.mxu0 %v3197_v43 }
 0x718   : > { %3200 = vmatpush3.bf16.msra.mxu0 %v3197_v43 }
 0x719   : > { %3202 = vmatprep.subr.bf16.mxu0 %v3201_v58 }
 0x71d   : > { %v3470_v44 = vpop.eup %3469 }
 0x71e   : > { %v1127_v46 = vsel %vm823_vm1, %v3470_v44, 0.0  ;;  %v3472_v47 = vpop.eup %3471 }
 0x71f   : > { %1128 = vadd.xlane.f32.xlu0 %v1127_v46  ;;  %v1130_v41 = vsel %vm823_vm1, %v3472_v47, 0.0  ;;  %v1482_v46 = vld [vmem:[%s4676_s11] sm:$0xff] }
 0x723   : > { %1131 = vadd.xlane.f32.xlu0 %v1130_v41 }
 0x7ac   : > { %v1129_v48 = vpop.xlane.xlu0 %1128 }
 0x7ad   : > { %3473 = vrcp.f32 %v1129_v48  ;;  %v1484_v48 = vld [vmem:[%s4676_s11 + $0x10] sm:$0xff] }
 0x7b0   : > { %v1132_v49 = vpop.xlane.xlu0 %1131 }
 0x7b1   : > { %3475 = vrcp.f32 %v1132_v49  ;;  %v1485_v49 = vld [vmem:[%s4676_s11 + $0x18] sm:$0xff] }
 0x7b7   : > { %v3474_v50 = vpop.eup %3473 }
 0x7b8   : > { %v1135_v51 = vmul.f32 %v3474_v50, %v3470_v44  ;;  %v3221_v50 = vpack.c.bf16 %v1485_v49, %v1484_v48 }
 0x7ba   : > { %3038 = vmatprep.mubr.msk.f32.mxu0 %vm823_vm1, %v1135_v51  ;;  %v1486_v51 = vld [vmem:[%s4676_s11 + $0x20] sm:$0xff] }
 0x7bb   : > { %v3476_v53 = vpop.eup %3475 }
 0x7bc   : > { %v1136_v54 = vmul.f32 %v3476_v53, %v3472_v47  ;;  %v1483_v47 = vld [vmem:[%s4676_s11 + $0x8] sm:$0xff] }
 0x7bd   : > { %v3217_v41 = vpack.c.bf16 %v1483_v47, %v1482_v46  ;;  %v1487_v53 = vld [vmem:[%s4676_s11 + $0x28] sm:$0xff] }
 0x7be   : > { %3039 = vmatmul.mubr.msk.f32.vlgmr.msra.gmra.mrb[2].mxu0 %vm823_vm1, %v1136_v54  ;;  %v3225_v54 = vpack.c.bf16 %v1487_v53, %v1486_v51 }
 0x7bf   : > { %3204 = vmatpush3.bf16.msra.mxu0 %v3201_v58  ;;  %v2839_v58 = vld [vmem:[%s4677_s10] ss:$0 sm:$0xff] }
 0x7c0   : > { %3206 = vmatprep.subr.bf16.mxu0 %v3205_v60 }
 0x7c3   : > { %3208 = vmatpush3.bf16.msra.mxu0 %v3205_v60 }
 0x7c4   : > { %3218 = vmatprep.subr.bf16.mxu0 %v3217_v41 }
 0x891   : > { %v3040_v61 = vpop.f32.mrb[2].mxu0 }
 0x892   : > { %1228 = vrot.lane.b32.xlu1 %v3040_v61, %s4624_s17  ;;  %v1215_v62 = vpop.f32.mrb[3].mxu0 }
 0x893   : > { %1226 = vrot.lane.b32.xlu0 %v1215_v62, %s4624_s17 }
 0x904   : > { %v1229_v63 = vpop.permute.xlu1 %1228 }
 0x905   : > { %v1227_v0 = vpop.permute.xlu0 %1226  ;;  %v1233_v2 = vsel %vm823_vm1, %v4249_v21, %v1229_v63  ;;  %v1373_v21 = vld [vmem:[%s4675_s9 + $0x8] sm:$0xff] }
 0x906   : > { %v1232_v1 = vsel %vm823_vm1, %v1011_v22, %v1227_v0 }
 0x907   : > { %3049 = vmatprep.mubr.msk.f32.mxu0 %vm677_vm0, %v1232_v1 }
 0x908   : > { %3050 = vmatmul.mubr.msk.f32.vlgmr.msra.gmra.mrb[4].mxu0 %vm677_vm0, %v1233_v2 }
 0x909   : > { %3220 = vmatpush3.bf16.msra.mxu0 %v3217_v41 }
 0x90a   : > { %3222 = vmatprep.subr.bf16.mxu0 %v3221_v50 }
 0x90d   : > { %3224 = vmatpush3.bf16.msra.mxu0 %v3221_v50  ;;  %v2845_v50 = vld [vmem:[%s4679_s15] ss:$0 sm:$0xff] }
 0x90e   : > { %3226 = vmatprep.subr.bf16.mxu0 %v3225_v54 }
 0x911   : > { %3228 = vmatpush3.bf16.msra.mxu0 %v3225_v54 }
 0x912   : > { %3230 = vmatprep.subr.bf16.mxu0 %v3229_v57 }
 0x915   : > { %3232 = vmatpush3.bf16.msra.mxu0 %v3229_v57 }
 0x9db   : > { %v3051_v4 = vpop.f32.mrb[4].mxu0 }
 0x9dc   : > { %v1323_v5 = vadd.f32 %v3051_v4, %v2834_v3  ;;  %v1317_v6 = vpop.f32.mrb[5].mxu0 }
 0x9dd   : > { %v1318_v7 = vadd.f32 %v2834_v3, %v1317_v6 }
 0x9de   : > { %v1327_v8 = vadd.f32 %v1323_v5, %v4204_v35 }
 0x9df   : > { %v1326_v9 = vadd.f32 %v1318_v7, %v4200_v33  ;;  %v1372_v33 = vld [vmem:[%s4675_s9] sm:$0xff] }
 0x9e0   : > { %v1333_v10 = vsel %vm677_vm0, %v1327_v8, 0.0  ;;  %v3209_v22 = vpack.c.bf16 %v1373_v21, %v1372_v33 }
 0x9e1   : > { %1334 = vadd.xlane.f32.xlu0 %v1333_v10  ;;  %v1330_v11 = vsel %vm677_vm0, %v1326_v9, 0.0 }
 0x9e2   : > { %1331 = vadd.xlane.f32.xlu1 %v1330_v11  ;;  %3210 = vmatprep.subr.bf16.mxu1 %v3209_v22 }
 0x9e3   : > { %3212 = vmatpush3.bf16.msra.mxu1 %v3209_v22 }
 0x9e4   : > { %3214 = vmatprep.subr.bf16.mxu1 %v3213_v25 }
 0x9e7   : > { %3216 = vmatpush3.bf16.msra.mxu1 %v3213_v25 }
 0xa6e   : > { %v1335_v12 = vpop.xlane.xlu0 %1334 }
 0xa6f   : > { %v1337_v13 = vmul.f32 0.03125, %v1335_v12  ;;  %v1332_v14 = vpop.xlane.xlu1 %1331 }
 0xa70   : > { %v1336_v15 = vmul.f32 0.03125, %v1332_v14 }
 0xa71   : > { %v1339_v16 = vsub.f32 %v1327_v8, %v1337_v13 }
 0xa72   : > { %v1338_v17 = vsub.f32 %v1326_v9, %v1336_v15 }
 0xa73   : > { %v1341_v18 = vmul.f32 %v1339_v16, %v1339_v16 }
 0xa74   : > { %v1340_v19 = vmul.f32 %v1338_v17, %v1338_v17 }
 0xa75   : > { %v1345_v20 = vsel %vm677_vm0, %v1341_v18, 0.0 }
 0xa76   : > { %1346 = vadd.xlane.f32.xlu1 %v1345_v20  ;;  %v1342_v35 = vsel %vm677_vm0, %v1340_v19, 0.0 }
 0xa77   : > { %1343 = vadd.xlane.f32.xlu0 %v1342_v35 }
 0xb03   : > { %v1347_v26 = vpop.xlane.xlu1 %1346 }
 0xb04   : > { %v1349_v27 = vmul.f32 0.03125, %v1347_v26  ;;  %v1344_v28 = vpop.xlane.xlu0 %1343 }
 0xb05   : > { %v1348_v29 = vmul.f32 0.03125, %v1344_v28 }
 0xb06   : > { %v1351_v30 = vadd.f32 1e-12, %v1349_v27 }
 0xb07   : > { %v1350_v31 = vadd.f32 1e-12, %v1348_v29 }
 0xb08   : > { %3477 = vrsqrt.f32 %v1351_v30 }
 0xb09   : > { %3479 = vrsqrt.f32 %v1350_v31 }
 0xb12   : > { %v3478_v32 = vpop.eup %3477 }
 0xb13   : > { %v3480_v36 = vpop.eup %3479  ;;  %v1355_v37 = vmul.f32 %v3478_v32, %v1339_v16 }
 0xb14   : > { %v1354_v38 = vmul.f32 %v3480_v36, %v1338_v17  ;;  %v2842_v17 = vld [vmem:[%s4678_s14] ss:$0 sm:$0xff] }
 0xb15   : > { %v1363_v40 = vmul.f32 %v2837_v34, %v1355_v37  ;;  %v2847_v36 = vld [vmem:[%s4670_s3 + $0x20] sm:$0xff]  ;;  %v2848_v37 = vld [vmem:[%s4670_s3 + $0x28] sm:$0xff] }
 0xb16   : > { %v1362_v42 = vmul.f32 %v2837_v34, %v1354_v38  ;;  %v3233_v38 = vpack.c.bf16 %v2848_v37, %v2847_v36 }
 0xb17   : > { %v1371_v44 = vadd.f32 %v2838_v39, %v1363_v40  ;;  %v2850_v40 = vld [vmem:[%s4670_s3 + $0x38] sm:$0xff] }
 0xb18   : > { %v1370_v43 = vadd.f32 %v2838_v39, %v1362_v42  ;;  %3234 = vmatprep.subr.bf16.mxu1 %v3233_v38  ;;  %v2849_v39 = vld [vmem:[%s4670_s3 + $0x30] sm:$0xff]  ;;  %s2619_s3 = scalar_lea.sflag [#allocation4], %s4162_s26 }
 0xb19   : > { %v3237_v42 = vpack.c.bf16 %v2850_v40, %v2849_v39 }
 0xb1a   : > { %3060 = vmatprep.mubr.msk.f32.mxu1 %vm677_vm0, %v1370_v43 }
 0xb1b   : > { %3061 = vmatmul.mubr.msk.f32.vlgmr.msra.gmra.mrb[6].mxu1 %vm677_vm0, %v1371_v44 }
 0xb1c   : > { %3236 = vmatpush3.bf16.msra.mxu1 %v3233_v38 }
 0xb1d   : > { %3238 = vmatprep.subr.bf16.mxu1 %v3237_v42 }
 0xb20   : > { %3240 = vmatpush3.bf16.msra.mxu1 %v3237_v42 }
 0xbee   : > { %v3062_v59 = vpop.f32.mrb[6].mxu1 }
 0xbef   : > { %v1461_v60 = vadd.f32 %v3062_v59, %v2839_v58  ;;  %v1455_v61 = vpop.f32.mrb[7].mxu1 }
 0xbf0   : > { %v1456_v62 = vadd.f32 %v2839_v58, %v1455_v61 }
 0xbf1   : > { %v1465_v63 = vmul.f32 %v1461_v60, %v1461_v60 }
 0xbf2   : > { %v1464_v0 = vmul.f32 %v1456_v62, %v1456_v62 }
 0xbf3   : > { %v1467_v1 = vmul.f32 %v1465_v63, %v1461_v60 }
 0xbf4   : > { %v1466_v2 = vmul.f32 %v1464_v0, %v1456_v62 }
 0xbf5   : > { %v1469_v3 = vmul.f32 0.044715, %v1467_v1 }
 0xbf6   : > { %v1468_v4 = vmul.f32 0.044715, %v1466_v2 }
 0xbf7   : > { %v1471_v5 = vadd.f32 %v1469_v3, %v1461_v60 }
 0xbf8   : > { %v1470_v6 = vadd.f32 %v1468_v4, %v1456_v62 }
 0xbf9   : > { %v1473_v7 = vmul.f32 0.7978846, %v1471_v5 }
 0xbfa   : > { %v1472_v8 = vmul.f32 0.7978846, %v1470_v6 }
 0xbfb   : > { %3481 = vtanh.f32 %v1473_v7 }
 0xbfc   : > { %3483 = vtanh.f32 %v1472_v8 }
 0xc05   : > { %v3482_v9 = vpop.eup %3481 }
 0xc06   : > { %v3484_v10 = vpop.eup %3483  ;;  %v1477_v11 = vadd.f32 1.0, %v3482_v9 }
 0xc07   : > { %v1476_v12 = vadd.f32 1.0, %v3484_v10 }
 0xc08   : > { %v1479_v13 = vmul.f32 0.5, %v1477_v11 }
 0xc09   : > { %v1478_v14 = vmul.f32 0.5, %v1476_v12 }
 0xc0a   : > { %v1481_v16 = vmul.f32 %v1479_v13, %v1461_v60  ;;  %v2852_v60 = vld [vmem:[%s4671_s4 + $0x1] ss:$0 sm:$0xff] }
 0xc0b   : > { %v1480_v15 = vmul.f32 %v1478_v14, %v1456_v62 }
 0xc0d   : > { %3079 = vmatprep.mubr.msk.f32.mxu0 %vm1497_vm4, %v1480_v15 }
 0xc0e   : > { %3080 = vmatmul.mubr.msk.f32.vlgmr.msra.gmra.mrb[6].mxu0 %vm1497_vm4, %v1481_v16 }
 0xce1   : > { %v3081_v18 = vpop.f32.mrb[6].mxu0 }
 0xce2   : > { %v1576_v19 = vadd.f32 %v3081_v18, %v2842_v17  ;;  %v1570_v20 = vpop.f32.mrb[7].mxu0 }
 0xce3   : > { %v1571_v35 = vadd.f32 %v2842_v17, %v1570_v20 }
 0xce4   : > { %v1580_v33 = vadd.f32 %v1576_v19, %v1371_v44 }
 0xce5   : > { %v1579_v21 = vadd.f32 %v1571_v35, %v1370_v43 }
 0xce6   : > { %v1586_v22 = vsel %vm677_vm0, %v1580_v33, 0.0 }
 0xce7   : > { %1587 = vadd.xlane.f32.xlu1 %v1586_v22  ;;  %v1583_v23 = vsel %vm677_vm0, %v1579_v21, 0.0 }
 0xce8   : > { %1584 = vadd.xlane.f32.xlu0 %v1583_v23 }
 0xd74   : > { %v1588_v24 = vpop.xlane.xlu1 %1587 }
 0xd75   : > { %v1590_v25 = vmul.f32 0.03125, %v1588_v24  ;;  %v1585_v26 = vpop.xlane.xlu0 %1584 }
 0xd76   : > { %v1589_v27 = vmul.f32 0.03125, %v1585_v26 }
 0xd77   : > { %v1592_v28 = vsub.f32 %v1580_v33, %v1590_v25 }
 0xd78   : > { %v1591_v29 = vsub.f32 %v1579_v21, %v1589_v27 }
 0xd79   : > { %v1594_v30 = vmul.f32 %v1592_v28, %v1592_v28 }
 0xd7a   : > { %v1593_v31 = vmul.f32 %v1591_v29, %v1591_v29 }
 0xd7b   : > { %v1598_v32 = vsel %vm677_vm0, %v1594_v30, 0.0 }
 0xd7c   : > { %1599 = vadd.xlane.f32.xlu1 %v1598_v32  ;;  %v1595_v34 = vsel %vm677_vm0, %v1593_v31, 0.0 }
 0xd7d   : > { %1596 = vadd.xlane.f32.xlu0 %v1595_v34 }
 0xe09   : > { %v1600_v43 = vpop.xlane.xlu1 %1599 }
 0xe0a   : > { %v1602_v44 = vmul.f32 0.03125, %v1600_v43  ;;  %v1597_v46 = vpop.xlane.xlu0 %1596 }
 0xe0b   : > { %v1601_v47 = vmul.f32 0.03125, %v1597_v46 }
 0xe0c   : > { %v1604_v41 = vadd.f32 1e-12, %v1602_v44 }
 0xe0d   : > { %v1603_v48 = vadd.f32 1e-12, %v1601_v47 }
 0xe0e   : > { %3485 = vrsqrt.f32 %v1604_v41 }
 0xe0f   : > { %3487 = vrsqrt.f32 %v1603_v48 }
 0xe18   : > { %v3486_v49 = vpop.eup %3485 }
 0xe19   : > { %v3488_v51 = vpop.eup %3487  ;;  %v1608_v53 = vmul.f32 %v3486_v49, %v1592_v28 }
 0xe1a   : > { %v1607_v54 = vmul.f32 %v3488_v51, %v1591_v29 }
 0xe1b   : > { %v1616_v56 = vmul.f32 %v2845_v50, %v1608_v53 }
 0xe1c   : > { %v1615_v57 = vmul.f32 %v2845_v50, %v1607_v54 }
 0xe1d   : > { %v4356_v59 = vadd.f32 %v2846_v55, %v1616_v56 }
 0xe1e   : > { %v4354_v58 = vadd.f32 %v2846_v55, %v1615_v57 }
 0xe20   : > { %3090 = vmatprep.mubr.msk.f32.mxu1 %vm677_vm0, %v4354_v58 }
 0xe21   : > { %3091 = vmatmul.mubr.msk.f32.vlgmr.msra.gmra.mrb[8].mxu1 %vm677_vm0, %v4356_v59 }
 0xef4   : > { %v3092_v61 = vpop.f32.mrb[8].mxu1 }
 0xef5   : > { %v1716_v62 = vadd.f32 %v3092_v61, %v2852_v60  ;;  %v1710_v63 = vpop.f32.mrb[9].mxu1 }
 0xef6   : > { %v1711_v0 = vadd.f32 %v2852_v60, %v1710_v63 }
 0xef8   : > { %3097 = vmatprep.mubr.msk.f32.mxu1 %vm823_vm1, %v1711_v0  ;;  %v4366_v1 = vpack.i.bf16 %v1716_v62, %v1711_v0 }
 0xefa   : > { %3443 = vrot.lane.b32.xlu1 %v4366_v1, %s3812_s6  ;;  %3438 = vrot.lane.b32.xlu0 %v4366_v1, %s3811_s12  ;;  %s4681_s12 = smov 48   ;;  %s4682_s6 = smov 64  }
 0xefe   : > { %1921 = vrot.lane.b32.xlu1 %v1711_v0, %s3813_s20 }
 0xf02   : > { %1923 = vrot.lane.b32.xlu1 %v1716_v62, %s3813_s20 }
 0xf6c   : > { %v3444_v2 = vpop.permute.xlu1 %3443  ;;  %v3439_v3 = vpop.permute.xlu0 %3438 }
 0xf6d   : > { %v3446_v4 = vunpack.i.h.bf16 %v3444_v2  ;;  %v3445_v5 = vunpack.i.l.bf16 %v3444_v2  ;;  %v3441_v6 = vunpack.i.h.bf16 %v3439_v3  ;;  %v3440_v7 = vunpack.i.l.bf16 %v3439_v3 }
 0xf6f   : > { %v3241_v8 = vpack.c.bf16 %v3441_v6, %v3440_v7  ;;  %v3251_v9 = vpack.c.bf16 %v3446_v4, %v3445_v5  ;;  %v2867_v6 = vld [vmem:[%s4674_s5 + $0x20] sm:$0xff]  ;;  %v2868_v7 = vld [vmem:[%s4674_s5 + $0x28] sm:$0xff] }
 0xf70   : > { %v1922_v10 = vpop.permute.xlu1 %1921 }
 0xf71   : > { %3243 = vmatprep.subr.msk.bf16.mxu1 %vm4222_vm2, %v3241_v8 }
 0xf72   : > { %3246 = vmatpush3.bf16.xpose.msk.msra.mxu1 %vm4222_vm2, %v3241_v8  ;;  %v3261_v8 = vpack.c.bf16 %v2868_v7, %v2867_v6  ;;  %v2890_v6 = vld [vmem:[%s4676_s11 + $0x70] sm:$0xff]  ;;  %v2891_v7 = vld [vmem:[%s4676_s11 + $0x78] sm:$0xff] }
 0xf73   : > { %3253 = vmatprep.subr.msk.bf16.mxu1 %vm4222_vm2, %v3251_v9 }
 0xf74   : > { %v1924_v11 = vpop.permute.xlu1 %1923 }
 0xf79   : > { %3098 = vmatmul.mubr.msk.f32.vlgmr.msra.gmra.mrb[10].mxu1 %vm823_vm1, %v1716_v62 }
 0xf7a   : > { %3256 = vmatpush3.bf16.xpose.msk.msra.mxu1 %vm4222_vm2, %v3251_v9  ;;  %3111 = vmatprep.mubr.msk.f32.mxu1 %vm823_vm1, %v1922_v10  ;;  %v2869_v9 = vld [vmem:[%s4674_s5 + $0x30] sm:$0xff]  ;;  %v2870_v10 = vld [vmem:[%s4674_s5 + $0x38] sm:$0xff] }
 0xf81   : > { %3112 = vmatmul.mubr.msk.f32.vlgmr.msra.gmra.mrb[12].mxu1 %vm823_vm1, %v1924_v11  ;;  %v3265_v11 = vpack.c.bf16 %v2870_v10, %v2869_v9  ;;  %v2881_v9 = vld [vmem:[%s4677_s10 + $0x1] ss:$0 sm:$0xff] }
0x104c   : > { %v3099_v12 = vpop.f32.mrb[10].mxu1 }
0x104d   : > { %v1809_v13 = vmul.f32 0.25, %v3099_v12  ;;  %v1799_v14 = vpop.f32.mrb[11].mxu1 }
0x104e   : > { %v1808_v15 = vmul.f32 0.25, %v1799_v14 }
0x104f   : > { %v1811_v16 = vadd.f32 %v1809_v13, %v4231_v52 }
0x1050   : > { %v1810_v17 = vadd.f32 %v1808_v15, %v4231_v52 }
0x1051   : > { %v1815_v18 = vsel %vm823_vm1, %v1811_v16, -inf }
0x1052   : > { %1816 = vmax.xlane.f32.xlu1 %v1815_v18  ;;  %v1812_v19 = vsel %vm823_vm1, %v1810_v17, -inf }
0x1053   : > { %1813 = vmax.xlane.f32.xlu0 %v1812_v19 }
0x1054   : > { %v3113_v45 = vpop.f32.mrb[12].mxu1 }
0x1055   : > { %v2003_v20 = vpop.f32.mrb[13].mxu1  ;;  %v2013_v35 = vmul.f32 0.25, %v3113_v45  ;;  %v2871_v45 = vld [vmem:[#allocation8 + $0x1] ss:$0 sm:$0xff] }
0x1056   : > { %v2012_v33 = vmul.f32 0.25, %v2003_v20 }
0x1057   : > { %v2015_v23 = vadd.f32 %v2013_v35, %v4231_v52 }
0x1058   : > { %v2014_v21 = vadd.f32 %v2012_v33, %v4231_v52 }
0x1059   : > { %v2019_v24 = vsel %vm823_vm1, %v2015_v23, -inf }
0x105a   : > { %v2016_v22 = vsel %vm823_vm1, %v2014_v21, -inf }
0x105b   : > { %2017 = vmax.xlane.f32.xlu0 %v2016_v22 }
0x105f   : > { %2020 = vmax.xlane.f32.xlu0 %v2019_v24 }
0x10df   : > { %v1817_v25 = vpop.xlane.xlu1 %1816 }
0x10e0   : > { %v1819_v26 = vsub.f32 %v1811_v16, %v1817_v25  ;;  %v1814_v27 = vpop.xlane.xlu0 %1813 }
0x10e1   : > { %v1818_v28 = vsub.f32 %v1810_v17, %v1814_v27 }
0x10e2   : > { %v1822_v29 = vmul.f32 1.442695, %v1819_v26 }
0x10e3   : > { %v1820_v30 = vmul.f32 1.442695, %v1818_v28 }
0x10e4   : > { %3489 = vpow2.f32 %v1822_v29 }
0x10e5   : > { %3491 = vpow2.f32 %v1820_v30 }
0x10e8   : > { %v2018_v31 = vpop.xlane.xlu0 %2017 }
0x10e9   : > { %v2022_v32 = vsub.f32 %v2014_v21, %v2018_v31 }
0x10eb   : > { %v2024_v34 = vmul.f32 1.442695, %v2022_v32 }
0x10ec   : > { %v2021_v36 = vpop.xlane.xlu0 %2020 }
0x10ed   : > { %3493 = vpow2.f32 %v2024_v34  ;;  %v2023_v37 = vsub.f32 %v2015_v23, %v2021_v36 }
0x10ee   : > { %v3490_v38 = vpop.eup %3489 }
0x10ef   : > { %v3492_v52 = vpop.eup %3491  ;;  %v2026_v39 = vmul.f32 1.442695, %v2023_v37  ;;  %v1827_v40 = vsel %vm823_vm1, %v3490_v38, 0.0  ;;  %v2877_v37 = vld [vmem:[%s4675_s9 + $0x28] sm:$0xff] }
0x10f0   : > { %1828 = vadd.xlane.f32.xlu1 %v1827_v40  ;;  %v1824_v42 = vsel %vm823_vm1, %v3492_v52, 0.0 }
0x10f1   : > { %3495 = vpow2.f32 %v2026_v39  ;;  %1825 = vadd.xlane.f32.xlu0 %v1824_v42  ;;  %v2879_v39 = vld [vmem:[%s4675_s9 + $0x38] sm:$0xff] }
0x10f7   : > { %v3494_v43 = vpop.eup %3493 }
0x10f8   : > { %v2028_v44 = vsel %vm823_vm1, %v3494_v43, 0.0 }
0x10f9   : > { %2029 = vadd.xlane.f32.xlu0 %v2028_v44 }
0x10fb   : > { %v3496_v46 = vpop.eup %3495 }
0x10fc   : > { %v2031_v47 = vsel %vm823_vm1, %v3496_v46, 0.0 }
0x10fd   : > { %2032 = vadd.xlane.f32.xlu1 %v2031_v47 }
0x110e   : > { %3453 = vrot.lane.b32.xlu1 %v4366_v1, %s4681_s12  ;;  %s666_s12 = scalar_lea.vmem [#allocation13], %s4685_s2  ;;  %s3821_s2 = smov [#allocation13]  }
0x110f   : > { %3448 = vrot.lane.b32.xlu0 %v4366_v1, %s4682_s6  ;;  %s4683_s6 = smov 16   ;;  %s2636_s22 = sshll.u32 %s666_s12, 4  ;;  %s4508_s22 = int_to_ptr.vmem [resolvable:$true] %s2636_s22 }
0x1110   : > { %s3689_s4 = scalar_lea.vmem %s4508_s22, 256  ;;  %s3693_s5 = sshll.u32 %s3821_s2, 4  ;;  %s3694_s5 = int_to_ptr.vmem [resolvable:$false] %s3693_s5 }
0x1111   : > { %p3690_p7 = scmp.ne.s32.totalorder %s4508_s22, %s3689_s4  ;;  %s3695_s8 = scalar_lea.vmem %s3694_s5, 512 }
0x1112   : > { %p3696_p13 = scmp.lt.s32.totalorder %s4508_s22, %s3694_s5  ;;  %p3697_p0 = scmp.lt.s32.totalorder %s3695_s8, %s3689_s4 }
0x1113   : > { %p3691_p4 = pnand %p3690_p7, %p4687_p10 }
0x1114   : > { %p3698_p2 = por %p3697_p0, %p3696_p13 }
0x1115   : > { %p3692_p1 = pneg %p3691_p4 }
0x1117   : > { %p3699_p8 = pnand %p3698_p2, %p3692_p1 }
0x117d   : > { %v1829_v48 = vpop.xlane.xlu1 %1828 }
0x117e   : > { %v1826_v41 = vpop.xlane.xlu0 %1825 }
0x117f   : > { %3497 = vrcp.f32 %v1826_v41 }
0x1180   : > { %3499 = vrcp.f32 %v1829_v48 }
0x1186   : > { %v2030_v49 = vpop.xlane.xlu0 %2029 }
0x1187   : > { %3501 = vrcp.f32 %v2030_v49  ;;  %v2874_v49 = vld [vmem:[#allocation10 + $0x1] ss:$0 sm:$0xff] }
0x1189   : > { %v3498_v50 = vpop.eup %3497 }
0x118a   : > { %v2033_v51 = vpop.xlane.xlu1 %2032  ;;  %v3449_v53 = vpop.permute.xlu0 %3448  ;;  %v1832_v54 = vmul.f32 %v3498_v50, %v3492_v52  ;;  %v2878_v52 = vld [vmem:[%s4675_s9 + $0x30] sm:$0xff] }
0x118b   : > { %3503 = vrcp.f32 %v2033_v51  ;;  %v3451_v55 = vunpack.i.h.bf16 %v3449_v53  ;;  %v3450_v56 = vunpack.i.l.bf16 %v3449_v53  ;;  %v3500_v60 = vpop.eup %3499  ;;  %v3273_v40 = vpack.c.bf16 %v2879_v39, %v2878_v52  ;;  %v2875_v51 = vld [vmem:[#allocation11 + $0x1] ss:$0 sm:$0xff] }
0x118c   : > { %3104 = vmatprep.mubr.msk.f32.mxu0 %vm823_vm1, %v1832_v54  ;;  %v1833_v1 = vmul.f32 %v3500_v60, %v3490_v38 }
0x118d   : > { %v3247_v57 = vpack.c.bf16 %v3451_v55, %v3450_v56 }
0x118e   : > { %v3454_v61 = vpop.permute.xlu1 %3453 }
0x118f   : > { %v3456_v62 = vunpack.i.h.bf16 %v3454_v61  ;;  %v3455_v63 = vunpack.i.l.bf16 %v3454_v61  ;;  %3248 = vmatprep.subr.bf16.mxu0 %v3247_v57  ;;  %v2884_v61 = vld [vmem:[%s4676_s11 + $0x40] sm:$0xff] }
0x1190   : > { %3250 = vmatpush3.bf16.msra.mxu0 %v3247_v57 }
0x1191   : > { %v3502_v0 = vpop.eup %3501  ;;  %v3257_v2 = vpack.c.bf16 %v3456_v62, %v3455_v63  ;;  %v2885_v62 = vld [vmem:[%s4676_s11 + $0x48] sm:$0xff] }
0x1192   : > { %v2036_v3 = vmul.f32 %v3502_v0, %v3494_v43  ;;  %v3277_v63 = vpack.c.bf16 %v2885_v62, %v2884_v61  ;;  %v2886_v0 = vld [vmem:[%s4676_s11 + $0x50] sm:$0xff] }
0x1193   : > { %3105 = vmatmul.mubr.msk.f32.vlgmr.msra.gmra.mrb[8].mxu0 %vm823_vm1, %v1833_v1  ;;  %3258 = vmatprep.subr.bf16.mxu0 %v3257_v2  ;;  %v2887_v1 = vld [vmem:[%s4676_s11 + $0x58] sm:$0xff] }
0x1194   : > { %3260 = vmatpush3.bf16.msra.mxu0 %v3257_v2  ;;  %3118 = vmatprep.mubr.msk.f32.mxu0 %vm823_vm1, %v2036_v3  ;;  %v3281_v2 = vpack.c.bf16 %v2887_v1, %v2886_v0  ;;  %v2888_v3 = vld [vmem:[%s4676_s11 + $0x60] sm:$0xff] }
0x1195   : > { %v3504_v4 = vpop.eup %3503  ;;  %3262 = vmatprep.subr.bf16.mxu0 %v3261_v8 }
0x1196   : > { %v2037_v5 = vmul.f32 %v3504_v4, %v3496_v46  ;;  %v2889_v4 = vld [vmem:[%s4676_s11 + $0x68] sm:$0xff] }
0x1198   : > { %3119 = vmatmul.mubr.msk.f32.vlgmr.msra.gmra.mrb[10].mxu0 %vm823_vm1, %v2037_v5  ;;  %v3285_v5 = vpack.c.bf16 %v2889_v4, %v2888_v3  ;;  %v2899_v4 = vld [vmem:[%s4680_s13 + $0x1] ss:$0 sm:$0xff] }
0x1199   : > { %3264 = vmatpush3.bf16.msra.mxu0 %v3261_v8  ;;  %v3289_v8 = vpack.c.bf16 %v2891_v7, %v2890_v6 }
0x119a   : > { %3266 = vmatprep.subr.bf16.mxu0 %v3265_v11 }
0x119d   : > { %3268 = vmatpush3.bf16.msra.mxu0 %v3265_v11 }
0x119e   : > { %3278 = vmatprep.subr.bf16.mxu0 %v3277_v63 }
0x1266   : > { %v3106_v12 = vpop.f32.mrb[8].mxu0 }
0x1267   : > { %v1912_v13 = vpop.f32.mrb[9].mxu0 }
0x126b   : > { %v3120_v14 = vpop.f32.mrb[10].mxu0 }
0x126c   : > { %v2116_v15 = vpop.f32.mrb[11].mxu0 }
0x126d   : > { %2127 = vrot.lane.b32.xlu1 %v2116_v15, %s4683_s6 }
0x1271   : > { %2129 = vrot.lane.b32.xlu1 %v3120_v14, %s4683_s6  ;;  %s2908_s6 = sshll.u32 %s3941_s1, 8 }
0x1272   : > { %s4506_s17 = scalar_lea.hbm %s4686_s24, %s2908_s6 }
0x12df   : > { %v2128_v16 = vpop.permute.xlu1 %2127 }
0x12e0   : > { %v2133_v17 = vsel %vm823_vm1, %v1912_v13, %v2128_v16 }
0x12e1   : > { %3129 = vmatprep.mubr.msk.f32.mxu0 %vm677_vm0, %v2133_v17 }
0x12e3   : > { %v2130_v18 = vpop.permute.xlu1 %2129 }
0x12e4   : > { %v2134_v19 = vsel %vm823_vm1, %v3106_v12, %v2130_v18 }
0x12e5   : > { %3130 = vmatmul.mubr.msk.f32.vlgmr.msra.gmra.mrb[12].mxu0 %vm677_vm0, %v2134_v19 }
0x12e6   : > { %3280 = vmatpush3.bf16.msra.mxu0 %v3277_v63 }
0x12e7   : > { %3282 = vmatprep.subr.bf16.mxu0 %v3281_v2 }
0x12ea   : > { %3284 = vmatpush3.bf16.msra.mxu0 %v3281_v2  ;;  %v2898_v2 = vld [vmem:[%s4679_s15 + $0x1] ss:$0 sm:$0xff] }
0x12eb   : > { %3286 = vmatprep.subr.bf16.mxu0 %v3285_v5 }
0x12ee   : > { %3288 = vmatpush3.bf16.msra.mxu0 %v3285_v5 }
0x12ef   : > { %3290 = vmatprep.subr.bf16.mxu0 %v3289_v8 }
0x12f2   : > { %3292 = vmatpush3.bf16.msra.mxu0 %v3289_v8 }
0x13b8   : > { %v3131_v20 = vpop.f32.mrb[12].mxu0 }
0x13b9   : > { %v2226_v35 = vadd.f32 %v3131_v20, %v2871_v45  ;;  %v2220_v33 = vpop.f32.mrb[13].mxu0 }
0x13ba   : > { %v2221_v21 = vadd.f32 %v2871_v45, %v2220_v33 }
0x13bb   : > { %v2230_v22 = vadd.f32 %v2226_v35, %v4356_v59 }
0x13bc   : > { %v2229_v23 = vadd.f32 %v2221_v21, %v4354_v58  ;;  %v2876_v58 = vld [vmem:[%s4675_s9 + $0x20] sm:$0xff] }
0x13bd   : > { %v2238_v24 = vsel %vm677_vm0, %v2230_v22, 0.0  ;;  %v3269_v38 = vpack.c.bf16 %v2877_v37, %v2876_v58 }
0x13be   : > { %2239 = vadd.xlane.f32.xlu1 %v2238_v24  ;;  %v2235_v25 = vsel %vm677_vm0, %v2229_v23, 0.0 }
0x13bf   : > { %2236 = vadd.xlane.f32.xlu0 %v2235_v25  ;;  %3270 = vmatprep.subr.bf16.mxu1 %v3269_v38 }
0x13c0   : > { %3272 = vmatpush3.bf16.msra.mxu1 %v3269_v38 }
0x13c1   : > { %3274 = vmatprep.subr.bf16.mxu1 %v3273_v40 }
0x13c4   : > { %3276 = vmatpush3.bf16.msra.mxu1 %v3273_v40 }
0x144b   : > { %v2240_v26 = vpop.xlane.xlu1 %2239 }
0x144c   : > { %v2242_v27 = vmul.f32 0.03125, %v2240_v26  ;;  %v2237_v28 = vpop.xlane.xlu0 %2236 }
0x144d   : > { %v2241_v29 = vmul.f32 0.03125, %v2237_v28 }
0x144e   : > { %v2244_v30 = vsub.f32 %v2230_v22, %v2242_v27 }
0x144f   : > { %v2243_v31 = vsub.f32 %v2229_v23, %v2241_v29  ;;  %v2893_v29 = vld [vmem:[%s4678_s14 + $0x1] ss:$0 sm:$0xff] }
0x1450   : > { %v2246_v36 = vmul.f32 %v2244_v30, %v2244_v30 }
0x1451   : > { %v2245_v32 = vmul.f32 %v2243_v31, %v2243_v31 }
0x1452   : > { %v2250_v59 = vsel %vm677_vm0, %v2246_v36, 0.0 }
0x1453   : > { %v2247_v34 = vsel %vm677_vm0, %v2245_v32, 0.0 }
0x1454   : > { %2248 = vadd.xlane.f32.xlu0 %v2247_v34 }
0x1458   : > { %2251 = vadd.xlane.f32.xlu0 %v2250_v59 }
0x14e1   : > { %v2249_v42 = vpop.xlane.xlu0 %2248 }
0x14e2   : > { %v2253_v43 = vmul.f32 0.03125, %v2249_v42 }
0x14e4   : > { %v2255_v44 = vadd.f32 1e-12, %v2253_v43 }
0x14e5   : > { %v2252_v46 = vpop.xlane.xlu0 %2251 }
0x14e6   : > { %3505 = vrsqrt.f32 %v2255_v44  ;;  %v2254_v47 = vmul.f32 0.03125, %v2252_v46 }
0x14e8   : > { %v2256_v41 = vadd.f32 1e-12, %v2254_v47 }
0x14ea   : > { %3507 = vrsqrt.f32 %v2256_v41 }
0x14f0   : > { %v3506_v48 = vpop.eup %3505 }
0x14f1   : > { %v2259_v50 = vmul.f32 %v3506_v48, %v2243_v31  ;;  %v2537_v48 = vld [vmem:[%s4684_s18] sm:$0xff] }
0x14f3   : > { %v2267_v53 = vmul.f32 %v2874_v49, %v2259_v50 }
0x14f4   : > { %v3508_v54 = vpop.eup %3507 }
0x14f5   : > { %v2260_v55 = vmul.f32 %v3508_v54, %v2244_v30  ;;  %v2275_v56 = vadd.f32 %v2875_v51, %v2267_v53  ;;  %v2539_v53 = vld [vmem:[%s4684_s18 + $0x10] sm:$0xff]  ;;  %v2540_v54 = vld [vmem:[%s4684_s18 + $0x18] sm:$0xff] }
0x14f7   : > { %v2268_v57 = vmul.f32 %v2874_v49, %v2260_v55  ;;  %3140 = vmatprep.mubr.msk.f32.mxu1 %vm677_vm0, %v2275_v56  ;;  %v2538_v49 = vld [vmem:[%s4684_s18 + $0x8] sm:$0xff]  ;;  %v3297_v55 = vpack.c.bf16 %v2540_v54, %v2539_v53 }
0x14f8   : > { %v3294_v50 = vpack.c.bf16 %v2538_v49, %v2537_v48 }
0x14f9   : > { %v2276_v60 = vadd.f32 %v2875_v51, %v2268_v57  ;;  %v3818_v51 = vmov 0.0|0.0  }
0x14fa   : > { %3293 = vmatprep.subr.bf16.mxu1 %v3818_v51 }
0x14fb   : > { %3141 = vmatmul.mubr.msk.f32.vlgmr.msra.gmra.mrb[14].mxu1 %vm677_vm0, %v2276_v60 }
0x14fc   : > { %3295 = vmatpush3.bf16.msra.mxu1 %v3294_v50 }
0x14fd   : > { %3296 = vmatprep.subr.bf16.mxu1 %v3818_v51 }
0x1500   : > { %3298 = vmatpush3.bf16.msra.mxu1 %v3297_v55 }
0x15ce   : > { %v3142_v10 = vpop.f32.mrb[14].mxu1 }
0x15cf   : > { %v2368_v11 = vadd.f32 %v3142_v10, %v2881_v9  ;;  %v2362_v12 = vpop.f32.mrb[15].mxu1 }
0x15d0   : > { %v2363_v13 = vadd.f32 %v2881_v9, %v2362_v12 }
0x15d1   : > { %v2372_v14 = vmul.f32 %v2368_v11, %v2368_v11 }
0x15d2   : > { %v2371_v15 = vmul.f32 %v2363_v13, %v2363_v13 }
0x15d3   : > { %v2374_v16 = vmul.f32 %v2372_v14, %v2368_v11 }
0x15d4   : > { %v2373_v17 = vmul.f32 %v2371_v15, %v2363_v13 }
0x15d5   : > { %v2376_v18 = vmul.f32 0.044715, %v2374_v16 }
0x15d6   : > { %v2375_v19 = vmul.f32 0.044715, %v2373_v17 }
0x15d7   : > { %v2378_v45 = vadd.f32 %v2376_v18, %v2368_v11 }
0x15d8   : > { %v2377_v20 = vadd.f32 %v2375_v19, %v2363_v13 }
0x15d9   : > { %v2380_v35 = vmul.f32 0.7978846, %v2378_v45 }
0x15da   : > { %v2379_v33 = vmul.f32 0.7978846, %v2377_v20 }
0x15db   : > { %3509 = vtanh.f32 %v2380_v35 }
0x15dc   : > { %3511 = vtanh.f32 %v2379_v33 }
0x15e5   : > { %v3510_v21 = vpop.eup %3509 }
0x15e6   : > { %v3512_v22 = vpop.eup %3511  ;;  %v2384_v23 = vadd.f32 1.0, %v3510_v21 }
0x15e7   : > { %v2383_v24 = vadd.f32 1.0, %v3512_v22 }
0x15e8   : > { %v2386_v25 = vmul.f32 0.5, %v2384_v23 }
0x15e9   : > { %v2385_v26 = vmul.f32 0.5, %v2383_v24 }
0x15ea   : > { %v2388_v28 = vmul.f32 %v2386_v25, %v2368_v11 }
0x15eb   : > { %v2387_v27 = vmul.f32 %v2385_v26, %v2363_v13 }
0x15ed   : > { %3159 = vmatprep.mubr.msk.f32.mxu0 %vm1497_vm4, %v2387_v27 }
0x15ee   : > { %3160 = vmatmul.mubr.msk.f32.vlgmr.msra.gmra.mrb[14].mxu0 %vm1497_vm4, %v2388_v28 }
0x16c1   : > { %v3161_v30 = vpop.f32.mrb[14].mxu0 }
0x16c2   : > { %v2478_v31 = vpop.f32.mrb[15].mxu0  ;;  %v2484_v32 = vadd.f32 %v3161_v30, %v2893_v29 }
0x16c3   : > { %v2479_v34 = vadd.f32 %v2893_v29, %v2478_v31 }
0x16c4   : > { %v2488_v58 = vadd.f32 %v2484_v32, %v2276_v60 }
0x16c5   : > { %v2487_v36 = vadd.f32 %v2479_v34, %v2275_v56  ;;  %v3820_v56 = vmov 0.0  }
0x16c6   : > { %v2496_v37 = vsel %vm677_vm0, %v2488_v58, 0.0  ;;  %3170 = vmatprep.mubr.msk.f32.mxu1 %vm3819_vm5, %v3820_v56 }
0x16c7   : > { %v2493_v59 = vsel %vm677_vm0, %v2487_v36, 0.0 }
0x16c8   : > { %2494 = vadd.xlane.f32.xlu0 %v2493_v59 }
0x16cc   : > { %2497 = vadd.xlane.f32.xlu0 %v2496_v37 }
0x1755   : > { %v2495_v38 = vpop.xlane.xlu0 %2494 }
0x1756   : > { %v2499_v52 = vmul.f32 0.03125, %v2495_v38 }
0x1758   : > { %v2501_v39 = vsub.f32 %v2487_v36, %v2499_v52 }
0x1759   : > { %v2498_v40 = vpop.xlane.xlu0 %2497 }
0x175a   : > { %v2500_v42 = vmul.f32 0.03125, %v2498_v40  ;;  %v2503_v43 = vmul.f32 %v2501_v39, %v2501_v39 }
0x175c   : > { %v2502_v44 = vsub.f32 %v2488_v58, %v2500_v42  ;;  %v2505_v46 = vsel %vm677_vm0, %v2503_v43, 0.0 }
0x175d   : > { %2506 = vadd.xlane.f32.xlu1 %v2505_v46 }
0x175e   : > { %v2504_v47 = vmul.f32 %v2502_v44, %v2502_v44 }
0x1760   : > { %v2508_v41 = vsel %vm677_vm0, %v2504_v47, 0.0 }
0x1761   : > { %2509 = vadd.xlane.f32.xlu1 %v2508_v41 }
0x17ea   : > { %v2507_v57 = vpop.xlane.xlu1 %2506 }
0x17eb   : > { %v2511_v60 = vmul.f32 0.03125, %v2507_v57 }
0x17ed   : > { %v2513_v61 = vadd.f32 1e-12, %v2511_v60 }
0x17ee   : > { %v2510_v62 = vpop.xlane.xlu1 %2509 }
0x17ef   : > { %3513 = vrsqrt.f32 %v2513_v61  ;;  %v2512_v63 = vmul.f32 0.03125, %v2510_v62 }
0x17f1   : > { %v2514_v0 = vadd.f32 1e-12, %v2512_v63 }
0x17f3   : > { %3515 = vrsqrt.f32 %v2514_v0 }
0x17f9   : > { %v3514_v1 = vpop.eup %3513 }
0x17fa   : > { %v2517_v3 = vmul.f32 %v3514_v1, %v2501_v39 }
0x17fc   : > { %v2525_v5 = vmul.f32 %v2898_v2, %v2517_v3 }
0x17fd   : > { %v3516_v6 = vpop.eup %3515 }
0x17fe   : > { %v2518_v7 = vmul.f32 %v3516_v6, %v2502_v44  ;;  %v2533_v8 = vadd.f32 %v2899_v4, %v2525_v5 }
0x1800   : > { %v2526_v9 = vmul.f32 %v2898_v2, %v2518_v7  ;;  %3171 = vmatmul.mubr.msk.f32.vlgmr.msra.gmra.mrb[16].mxu1 %vm677_vm0, %v2533_v8  ;;  %2535 = vst.msk [vmem:[%s666_s12] sm:$0xff] %vm677_vm0, %v2533_v8 }
0x1802   : > { %v2534_v10 = vadd.f32 %v2899_v4, %v2526_v9 }
0x1804   : > { %2536 = vst.msk [vmem:[%s666_s12 + $0x8] sm:$0xff] %vm677_vm0, %v2534_v10 }
0x1805   : > { %3702 = shalt.err (!%p3699_p8)
}
0x1806   : > { %s3703_s12 = scalar_lea.hbm %s4506_s17, 256  ;;  %s3707_s7 = scalar_lea.hbm %s4686_s24, 512 }
0x1807   : > { %p3704_p6 = scmp.ne.s32.totalorder %s4506_s17, %s3703_s12  ;;  %p3708_p3 = scmp.lt.u32.totalorder %s4506_s17, %s4686_s24 }
0x1808   : > { %p3709_p5 = scmp.lt.u32.totalorder %s3707_s7, %s3703_s12  ;;  %p3711_p7 = scmp.lt.u32.totalorder %s3703_s12, %s4506_s17 }
0x1809   : > { %p3705_p11 = pnand %p3704_p6, %p4687_p10 }
0x180a   : > { %p3710_p9 = por %p3709_p5, %p3708_p3 }
0x180b   : > { %p3706_p12 = pneg %p3705_p11 }
0x180c   : > { %p3712_p4 = por %p3711_p7, %p3710_p9 }
0x180e   : > { %p3713_p1 = pnand %p3712_p4, %p3706_p12 }
0x1810   : > { %3716 = shalt.err (!%p3713_p1)
}
0x1811   : > { %s3822_s4 = smov 128   ;;  %s3823_s8 = smov 8   ;;  %vm2616_vm6 = vcmask 253952  }
0x1812   : > { %3321 = dma.vmem_to_hbm [thread:$0]  (%p4687_p10), %s4508_s22, 256, %s4506_s17, %s2619_s3, %s3822_s4, %s3822_s4, %s3823_s8  }
0x1813   : > { %s4688_s7 = sld [smem:[#allocation38_spill]]  ;;  %s2904_s12 = sshll.u32 %s3941_s1, 4 }
0x1814   : > { %s672_s2 = scalar_lea.vmem [#allocation14], %s4162_s26  ;;  %s4689_s11 = sld [smem:[#allocation40_spill]] }
0x1815   : > { %s2652_s5 = sshll.u32 %s672_s2, 4  ;;  %s2624_s3 = scalar_lea.sflag [#allocation15], %s4162_s26  ;;  %s4544_s5 = int_to_ptr.vmem [resolvable:$true] %s2652_s5 }
0x1816   : > { %s3717_s17 = scalar_lea.vmem %s4544_s5, 16  ;;  %s3824_s1 = smov [#allocation14]  }
0x1817   : > { %p3718_p13 = scmp.ne.s32.totalorder %s4544_s5, %s3717_s17  ;;  %s3721_s22 = sshll.u32 %s3824_s1, 4  ;;  %s3722_s22 = int_to_ptr.vmem [resolvable:$false] %s3721_s22 }
0x1818   : > { %s3723_s4 = scalar_lea.vmem %s3722_s22, 32  ;;  %p3724_p8 = scmp.lt.s32.totalorder %s4544_s5, %s3722_s22 }
0x1819   : > { %v2541_v11 = vld [vmem:[%s4688_s7] sm:$0x1]  ;;  %p3719_p0 = pnand %p3718_p13, %p4687_p10  ;;  %p3725_p6 = scmp.lt.s32.totalorder %s3723_s4, %s3717_s17 }
0x181a   : > { %s4542_s13 = scalar_lea.hbm %s4689_s11, %s2904_s12 }
0x181b   : > { %p3720_p2 = pneg %p3719_p0  ;;  %p3726_p11 = por %p3725_p6, %p3724_p8 }
0x181d   : > { %p3727_p12 = pnand %p3726_p11, %p3720_p2 }
0x18d3   : > { %v2611_v12 = vpop.f32.mrb[16].mxu1 }
0x18d4   : > { %v2612_v13 = vadd.f32 %v2611_v12, %v2541_v11  ;;  %v3172_v14 = vpop.f32.mrb[17].mxu1 }
0x18d6   : > { %3517 = vtanh.f32 %v2612_v13 }
0x18e0   : > { %v3518_v15 = vpop.eup %3517 }
0x18e1   : > { %2617 = vst.msk [vmem:[%s672_s2] sm:$0x1] %vm2616_vm6, %v3518_v15 }
0x18e2   : > { %3730 = shalt.err (!%p3727_p12)
}
0x18e3   : > { %s3731_s9 = scalar_lea.hbm %s4542_s13, 16  ;;  %s3735_s8 = scalar_lea.hbm %s4689_s11, 32 }
0x18e4   : > { %p3732_p3 = scmp.ne.s32.totalorder %s4542_s13, %s3731_s9  ;;  %p3736_p7 = scmp.lt.u32.totalorder %s4542_s13, %s4689_s11 }
0x18e5   : > { %p3737_p4 = scmp.lt.u32.totalorder %s3735_s8, %s3731_s9  ;;  %p3739_p13 = scmp.lt.u32.totalorder %s3731_s9, %s4542_s13 }
0x18e6   : > { %p3733_p5 = pnand %p3732_p3, %p4687_p10 }
0x18e7   : > { %p3738_p1 = por %p3737_p4, %p3736_p7 }
0x18e8   : > { %p3734_p9 = pneg %p3733_p5 }
0x18e9   : > { %p3740_p0 = por %p3739_p13, %p3738_p1 }
0x18eb   : > { %p3741_p2 = pnand %p3740_p0, %p3734_p9 }
0x18ed   : > { %3744 = shalt.err (!%p3741_p2)
}
0x18ee   : > { %3322 = dma.vmem_to_hbm [thread:$0]  (%p4687_p10), %s4544_s5, 16, %s4542_s13, %s2624_s3  }
0x18ef PF: > { %s2664_s7 = sand.u32 1, %s3787_s27   ;;  %p4690_p8 = scmp.ne.s32.totalorder %s4660_s0, 0 }
0x18f0   : > { %p4691_p6 = scmp.ge.s32.totalorder %s3799_s30, 2  ;;  %s2665_s12 = scalar_lea.sflag [#allocation4], %s2664_s7 }
0x18f2   : > { %p3346_p11 = pnand %p4691_p6, %p4690_p8 }
0x18f4   : > { %3778 = dma.done.wait (!%p3346_p11), %s2665_s12, 256  }
0x18f5   : > { %3780 = vsyncadd (!%p3346_p11), %s2665_s12, 4294967040  ;;  %s2674_s2 = scalar_lea.sflag [#allocation15], %s2664_s7 }
0x18f6   : > { %3782 = dma.done.wait (!%p3346_p11), %s2674_s2, 16  }
0x18f7   : > { %3784 = vsyncadd (!%p3346_p11), %s2674_s2, 4294967280  ;;  %p38_p10 = scmp.ge.s32.totalorder %s4089_s21, 4   ;;  %s4692_s27 = smov %s3791_s28 }
0x18f8   : > { %s4693_s28 = smov %s3795_s29  ;;  %s4694_s29 = smov %s4101_s19 }
0x18f9   : > { %s4695_s30 = smov %s4089_s21  ;;  %40 = sbr.rel (!%p38_p10) target bundleno = 30 (0x1e), region = 182 }
0x1900   :  { %2678 = vsyncpa [#allocation3], 1 }
0x1901   :  { %2680 = vsyncpa [#allocation3 + $0x1], 1 }
0x1902   :  { %2681 = vsyncpa [#allocation6], 1 }
0x1903   :  { %2682 = vsyncpa [#allocation9], 1 }
0x1904   :  { %2683 = vsyncpa [#allocation12], 1 }
0x1905   :  { %2684 = vsyncpa [#allocation4], 1 }
0x1906   :  { %2686 = vsyncpa [#allocation4 + $0x1], 1 }
0x1907   :  { %2687 = vsyncpa [#allocation15], 1 }
0x1908   :  { %2689 = vsyncpa [#allocation15 + $0x1], 1 }

</bundles_post_ra>
